<compile_context>
chip_gen: v7x
topology: tpu7x:2x2x1
jax: 0.10.0
libtpu: 0.0.40
codegen_flags: <defaults>
</compile_context>

<pallas_src>
import jax
import jax.numpy as jnp
from jax.experimental import pallas as pl
from jax.experimental.pallas import tpu as pltpu

D = 24 * 24  # 576 features, fixed by the module definition (Linear(576, 576))


def fcn_kernel(x_ref, w_ref, b_ref, o_ref):
    # x_ref: [TM, D] f32, w_ref: [D, D] bf16, b_ref: [1, D] f32, o_ref: [TM, D] f32
    x_bf16 = x_ref[...].astype(jnp.bfloat16)            # VPU cast, hidden under DMA
    acc = jnp.dot(x_bf16, w_ref[...],
                  preferred_element_type=jnp.float32)   # MXU, f32 accumulation
    o_ref[...] = (acc + b_ref[...]).astype(o_ref.dtype)


def _choose_tile_rows(M: int) -> int:
    """Row-tile size: big enough to amortize per-step overhead, small enough to
    fit v5e's 16 MiB scoped VMEM, and (for large M) guaranteeing >= 2 grid
    steps so v7x's two TensorCores both get work."""
    CAP = 1024        # ~10 MiB peak VMEM at f32 x/out double-buffered + bf16 weight
    MIN_STEPS = 2     # make the "parallel" grid axis shard across v7x's 2 TCs
    if M <= 512:
        return M      # one tile; splitting tiny M only adds per-step overhead
    tm = pl.cdiv(M, MIN_STEPS)
    tm = ((tm + 7) // 8) * 8          # sublane-align
    return min(CAP, tm)


def fold_params(params):
    """Fold 4 Linear layers (W as [D_in, D_out], b as [1, D]) into one effective layer."""
    (w1, b1), (w2, b2), (w3, b3), (w4, b4) = params
    w_eff = w1 @ w2 @ w3 @ w4
    b_eff = ((b1 @ w2 + b2) @ w3 + b3) @ w4 + b4
    return w_eff.astype(jnp.bfloat16), b_eff.astype(jnp.float32)


def _build_forward(single_buffer_resident: bool):
    """Build the jitted forward; `single_buffer_resident` toggles pl.Buffered(1)
    on the constant (weight/bias) BlockSpecs."""

    @jax.jit
    def fcn_forward(x, w_eff, b_eff):
        """x: [B, C, 24, 24] f32 -> [B, C, 24, 24] f32."""
        B, C, H, W = x.shape
        assert H * W == D, f"spatial dims must flatten to {D}"
        M = B * C
        x2d = x.reshape(M, D)

        TM = _choose_tile_rows(M)
        grid = (pl.cdiv(M, TM),)

        resident_kw = {}
        if single_buffer_resident:
            # Constant index_map -> block never changes; one buffer is enough.
            resident_kw = dict(pipeline_mode=pl.Buffered(1))

        cost = pl.CostEstimate(
            flops=2 * M * D * D,
            transcendentals=0,
            bytes_accessed=x2d.size * 4 + w_eff.size * 2 + b_eff.size * 4 + M * D * 4,
        )

        out2d = pl.pallas_call(
            fcn_kernel,
            out_shape=jax.ShapeDtypeStruct((M, D), jnp.float32),
            grid_spec=pltpu.PrefetchScalarGridSpec(
                num_scalar_prefetch=0,
                grid=grid,
                in_specs=[
                    # x rows: auto-pipelined per grid step
                    pl.BlockSpec((TM, D), lambda i: (i, 0)),
                    # folded weight: fetched once, resident in VMEM
                    pl.BlockSpec((D, D), lambda i: (0, 0), **resident_kw),
                    # folded bias: fetched once, resident in VMEM
                    pl.BlockSpec((1, D), lambda i: (0, 0), **resident_kw),
                ],
                out_specs=pl.BlockSpec((TM, D), lambda i: (i, 0)),
            ),
            compiler_params=pltpu.CompilerParams(
                # Row tiles are independent -> shard across v7x's two TensorCores
                # (harmless on v5e/v6e, which have a single TC).
                dimension_semantics=("parallel",),
            ),
            cost_estimate=cost,
        )(x2d, w_eff, b_eff)

        return out2d.reshape(B, C, H, W)

    return fcn_forward


def init_params(key):
    """Deterministic synthetic params: 4 x (W[D_in, D_out], b[1, D_out]), torch-like init."""
    params = []
    bound = 1.0 / jnp.sqrt(D)
    for _ in range(4):
        kw, kb, key = jax.random.split(key, 3)
        w = jax.random.uniform(kw, (D, D), jnp.float32, -bound, bound)
        b = jax.random.uniform(kb, (1, D), jnp.float32, -bound, bound)
        params.append((w, b))
    return params


def fcn_reference(x, params):
    """Pure-JAX f32 reference of the original (unfolded) PyTorch forward."""
    B, C, H, W = x.shape
    h = x.reshape(B, C, H * W)
    for w, b in params:
        h = jnp.einsum("bcd,de->bce", h, w) + b[0]
    return h.reshape(B, C, H, W)


if __name__ == "__main__":
    key = jax.random.PRNGKey(0)
    kx, kp = jax.random.split(key)

    # Small batch/channels; spatial must be 24x24 because fc1 is Linear(576, 576).
    B, C = 2, 4
    x = jax.random.normal(kx, (B, C, 24, 24), jnp.float32)
    params = init_params(kp)

    # One-time fold of the 4 layers + bf16 cast of the effective weight.
    w_eff, b_eff = fold_params(params)
    ref = fcn_reference(x, params)

    def _run(single_buffer_resident):
        fwd = _build_forward(single_buffer_resident)
        out = jax.block_until_ready(fwd(x, w_eff, b_eff))
        max_diff = float(jnp.max(jnp.abs(out - ref)))
        # Layer folding + bf16 weights change numerics slightly vs the chained
        # f32 reference; 1e-2 comfortably bounds the bf16 mantissa error here.
        ok = bool(jnp.allclose(out, ref, atol=1e-2, rtol=1e-2))
        return out, ok, max_diff

    try:
        out, ok, max_diff = _run(single_buffer_resident=True)
    except Exception:
        out, ok, max_diff = None, False, None

    if not ok:
        # Fallback: default double-buffered resident weight (+~0.65 MiB VMEM,
        # zero perf impact) if Buffered(1) is unsupported on this jax version.
        out, ok, max_diff = _run(single_buffer_resident=False)

    assert out.shape == x.shape
    assert ok, f"mismatch vs reference: max abs diff = {max_diff}"

    print("KERNEL_OK")
</pallas_src>

<mosaic_0001>
module attributes {stable_mosaic.version = 11 : i64} {
  func.func @fcn_kernel(%arg0: i32, %arg1: memref<8x576xf32, #tpu.memory_space<vmem>>, %arg2: memref<576x576xbf16, #tpu.memory_space<vmem>>, %arg3: memref<1x576xf32, #tpu.memory_space<vmem>>, %arg4: memref<8x576xf32, #tpu.memory_space<vmem>>) attributes {dimension_semantics = [#tpu.dimension_semantics<parallel>], iteration_bounds = array<i64: 1>, scalar_prefetch = 0 : i64, scratch_operands = 0 : i64, tpu.core_type = #tpu.core_type<tc>, window_params = [{transform_indices = @transform_0, window_bounds = array<i64: 8, 576>}, {pipeline_mode = #tpu.pipeline_mode<synchronous>, transform_indices = @transform_1, window_bounds = array<i64: 576, 576>}, {pipeline_mode = #tpu.pipeline_mode<synchronous>, transform_indices = @transform_2, window_bounds = array<i64: 1, 576>}, {transform_indices = @transform_3, window_bounds = array<i64: 8, 576>}]} {
    %c0 = arith.constant 0 : index
    %c0_0 = arith.constant 0 : index
    %0 = vector.load %arg1[%c0, %c0_0] : memref<8x576xf32, #tpu.memory_space<vmem>>, vector<8x576xf32>
    %1 = arith.truncf %0 : vector<8x576xf32> to vector<8x576xbf16>
    %c0_1 = arith.constant 0 : index
    %c0_2 = arith.constant 0 : index
    %2 = vector.load %arg2[%c0_1, %c0_2] : memref<576x576xbf16, #tpu.memory_space<vmem>>, vector<576x576xbf16>
    %cst = arith.constant dense<0.000000e+00> : vector<8x576xf32>
    %3 = tpu.matmul %1, %2, %cst {dimension_numbers = #tpu.dot_dimension_numbers<[1], [0], [0], [1], [0, 0, 1, 1], [], []>} : vector<8x576xbf16>, vector<576x576xbf16>, vector<8x576xf32> -> vector<8x576xf32>
    %c0_3 = arith.constant 0 : index
    %c0_4 = arith.constant 0 : index
    %4 = vector.load %arg3[%c0_3, %c0_4] : memref<1x576xf32, #tpu.memory_space<vmem>>, vector<1x576xf32>
    %5 = vector.broadcast %4 : vector<1x576xf32> to vector<8x576xf32>
    %6 = arith.addf %3, %5 : vector<8x576xf32>
    %c0_5 = arith.constant 0 : index
    %c0_6 = arith.constant 0 : index
    %7 = vector.load %arg4[%c0_5, %c0_6] : memref<8x576xf32, #tpu.memory_space<vmem>>, vector<8x576xf32>
    tpu.vector_store %arg4[%c0_5, %c0_6], %6 {strides = array<i32>} : memref<8x576xf32, #tpu.memory_space<vmem>>, vector<8x576xf32>,
    return
  }
  func.func @transform_0(%arg0: i32) -> (i32, i32) {
    %c0_i32 = arith.constant 0 : i32
    %c0_i32_0 = arith.constant 0 : i32
    return %arg0, %c0_i32 : i32, i32
  }
  func.func @transform_1(%arg0: i32) -> (i32, i32) {
    %c0_i32 = arith.constant 0 : i32
    %c0_i32_0 = arith.constant 0 : i32
    %c0_i32_1 = arith.constant 0 : i32
    return %c0_i32, %c0_i32_0 : i32, i32
  }
  func.func @transform_2(%arg0: i32) -> (i32, i32) {
    %c0_i32 = arith.constant 0 : i32
    %c0_i32_0 = arith.constant 0 : i32
    %c0_i32_1 = arith.constant 0 : i32
    return %c0_i32, %c0_i32_0 : i32, i32
  }
  func.func @transform_3(%arg0: i32) -> (i32, i32) {
    %c0_i32 = arith.constant 0 : i32
    %c0_i32_0 = arith.constant 0 : i32
    return %arg0, %c0_i32 : i32, i32
  }
}

module attributes {stable_mosaic.version = 11 : i64} {
  func.func @fcn_kernel(%arg0: i32, %arg1: memref<8x576xf32, #tpu.memory_space<vmem>>, %arg2: memref<576x576xbf16, #tpu.memory_space<vmem>>, %arg3: memref<1x576xf32, #tpu.memory_space<vmem>>, %arg4: memref<8x576xf32, #tpu.memory_space<vmem>>) attributes {dimension_semantics = [#tpu.dimension_semantics<parallel>], iteration_bounds = array<i64: 1>, scalar_prefetch = 0 : i64, scratch_operands = 0 : i64, tpu.core_type = #tpu.core_type<tc>, window_params = [{transform_indices = @transform_0, window_bounds = array<i64: 8, 576>}, {pipeline_mode = #tpu.pipeline_mode<synchronous>, transform_indices = @transform_1, window_bounds = array<i64: 576, 576>}, {pipeline_mode = #tpu.pipeline_mode<synchronous>, transform_indices = @transform_2, window_bounds = array<i64: 1, 576>}, {transform_indices = @transform_3, window_bounds = array<i64: 8, 576>}]} {
    %c0 = arith.constant 0 : index
    %c0_0 = arith.constant 0 : index
    %0 = vector.load %arg1[%c0, %c0_0] : memref<8x576xf32, #tpu.memory_space<vmem>>, vector<8x576xf32>
    %1 = arith.truncf %0 : vector<8x576xf32> to vector<8x576xbf16>
    %c0_1 = arith.constant 0 : index
    %c0_2 = arith.constant 0 : index
    %2 = vector.load %arg2[%c0_1, %c0_2] : memref<576x576xbf16, #tpu.memory_space<vmem>>, vector<576x576xbf16>
    %cst = arith.constant dense<0.000000e+00> : vector<8x576xf32>
    %3 = tpu.matmul %1, %2, %cst {dimension_numbers = #tpu.dot_dimension_numbers<[1], [0], [0], [1], [0, 0, 1, 1], [], []>} : vector<8x576xbf16>, vector<576x576xbf16>, vector<8x576xf32> -> vector<8x576xf32>
    %c0_3 = arith.constant 0 : index
    %c0_4 = arith.constant 0 : index
    %4 = vector.load %arg3[%c0_3, %c0_4] : memref<1x576xf32, #tpu.memory_space<vmem>>, vector<1x576xf32>
    %5 = vector.broadcast %4 : vector<1x576xf32> to vector<8x576xf32>
    %6 = arith.addf %3, %5 : vector<8x576xf32>
    %c0_5 = arith.constant 0 : index
    %c0_6 = arith.constant 0 : index
    %7 = vector.load %arg4[%c0_5, %c0_6] : memref<8x576xf32, #tpu.memory_space<vmem>>, vector<8x576xf32>
    tpu.vector_store %arg4[%c0_5, %c0_6], %6 {strides = array<i32>} : memref<8x576xf32, #tpu.memory_space<vmem>>, vector<8x576xf32>,
    return
  }
  func.func @transform_0(%arg0: i32) -> (i32, i32) {
    %c0_i32 = arith.constant 0 : i32
    %c0_i32_0 = arith.constant 0 : i32
    return %arg0, %c0_i32 : i32, i32
  }
  func.func @transform_1(%arg0: i32) -> (i32, i32) {
    %c0_i32 = arith.constant 0 : i32
    %c0_i32_0 = arith.constant 0 : i32
    %c0_i32_1 = arith.constant 0 : i32
    return %c0_i32, %c0_i32_0 : i32, i32
  }
  func.func @transform_2(%arg0: i32) -> (i32, i32) {
    %c0_i32 = arith.constant 0 : i32
    %c0_i32_0 = arith.constant 0 : i32
    %c0_i32_1 = arith.constant 0 : i32
    return %c0_i32, %c0_i32_0 : i32, i32
  }
  func.func @transform_3(%arg0: i32) -> (i32, i32) {
    %c0_i32 = arith.constant 0 : i32
    %c0_i32_0 = arith.constant 0 : i32
    return %arg0, %c0_i32 : i32, i32
  }
}

</mosaic_0001>

<bundles_post_ra>
// kernel: fcn_forward.1
= control target key start
LH: loop header
LB: loop body
LE: loop exit
PB: predicated region body
PF: predicated region fallthrough
CT: control target
= control target key end

     0   :  { %8 = vsyncpa [#allocation3], 0  ;;  %s2144_s12 = smov [#allocation2]   ;;  %s2244_s0 = inlined_call_operand.vmem [shape: f32[8,576], index: 0, kind: input, shape index: {}]   ;;  %s2245_s1 = inlined_call_operand.hbm [shape: bf16[576,576], index: 1, kind: input, shape index: {}]   ;;  %s2246_s2 = inlined_call_operand.vmem [shape: f32[1,576], index: 2, kind: input, shape index: {}]   ;;  %s2247_s3 = inlined_call_operand.vmem [shape: f32[8,576], index: 3, kind: output, shape index: {}]  }
   0x1   :  { %s16_s13 = sshll.u32 %s2144_s12, 4  ;;  %s2120_s16 = scalar_lea.hbm %s2245_s1, 23040  ;;  %s17_s13 = int_to_ptr.vmem [resolvable:$true] %s16_s13 }
   0x2   :  { %p2121_p0 = scmp.ne.s32.totalorder %s2245_s1, %s2120_s16  ;;  %p2124_p1 = scmp.lt.u32.totalorder %s2120_s16, %s2245_s1 }
   0x4   :  { %p2126_p2 = pnand %p2124_p1, %p2121_p0 }
   0x6   :  { %2129 = shalt.err (!%p2126_p2)
}
   0x7   :  { %s2130_s21 = scalar_lea.vmem %s17_s13, 23040  ;;  %p2135_p4 = scmp.lt.s32.totalorder %s17_s13, %s17_s13 }
   0x8   :  { %p2131_p3 = scmp.ne.s32.totalorder %s17_s13, %s2130_s21  ;;  %p2136_p5 = scmp.lt.s32.totalorder %s2130_s21, %s2130_s21 }
   0xa   :  { %p2137_p6 = por %p2136_p5, %p2135_p4 }
   0xc   :  { %p2138_p7 = pnand %p2137_p6, %p2131_p3 }
   0xe   :  { %2141 = shalt.err (!%p2138_p7)
}
   0xf   :  { %s2145_s22 = smov 320   ;;  %s2146_s23 = smov 20  }
  0x10   :  { %22 = dma.hbm_to_vmem [thread:$0]  %s2245_s1, 23040, %s17_s13, [#allocation3], %s2145_s22, %s2145_s22, %s2146_s23  }
  0x11   :  { %2142 = dma.done.wait [#allocation3], 23040  }
  0x12   :  { %2143 = vsyncadd [#allocation3], 4294944256  ;;  %v1868_v0 = vld [vmem:[#allocation2 + $0x4] ss:$20 sps:$4 sm:$0xff]   ;;  %v1870_v1 = vld [vmem:[#allocation2 + $0xc] ss:$20 sps:$4 sm:$0xff]  }
  0x13   :  { %1222 = vmatprep.subr.bf16.mxu0 %v1868_v0  ;;  %v1872_v2 = vld [vmem:[#allocation2] ss:$20 sps:$4 sm:$0xff]   ;;  %v1873_v3 = vld [vmem:[#allocation2 + $0x8] ss:$20 sps:$4 sm:$0xff]   ;;  %1345 = vmatprep.subr.bf16.mxu1 %v1870_v1  ;;  %v1879_v7 = vld [vmem:[#allocation2 + $0x30] ss:$20 sps:$4 sm:$0xff]  }
  0x14   :  { %v1874_v4 = vld [vmem:[#allocation2 + $0x2c] ss:$20 sps:$4 sm:$0xff]   ;;  %1223 = vmatpush1.bf16.msra.mxu0 %v1872_v2  ;;  %1346 = vmatpush1.bf16.msra.mxu1 %v1873_v3  ;;  %v1876_v5 = vld [vmem:[#allocation2 + $0x34] ss:$20 sps:$4 sm:$0xff]   ;;  %v1882_v9 = vld [vmem:[#allocation2 + $0x5c] ss:$20 sps:$4 sm:$0xff]  }
  0x15   :  { %v1878_v6 = vld [vmem:[#allocation2 + $0x28] ss:$20 sps:$4 sm:$0xff]   ;;  %1224 = vmatprep.subr.bf16.mxu0 %v1874_v4  ;;  %1347 = vmatprep.subr.bf16.mxu1 %v1876_v5  ;;  %v1884_v10 = vld [vmem:[#allocation2 + $0x50] ss:$20 sps:$4 sm:$0xff]   ;;  %v1885_v11 = vld [vmem:[#allocation2 + $0x58] ss:$20 sps:$4 sm:$0xff]  }
  0x16   :  { %v1880_v8 = vld [vmem:[#allocation2 + $0x54] ss:$20 sps:$4 sm:$0xff]   ;;  %v1886_v12 = vld [vmem:[#allocation2 + $0x7c] ss:$20 sps:$4 sm:$0xff]   ;;  %v1888_v13 = vld [vmem:[#allocation2 + $0x84] ss:$20 sps:$4 sm:$0xff]  }
  0x17   :  { %v1890_v14 = vld [vmem:[#allocation2 + $0x78] ss:$20 sps:$4 sm:$0xff]   ;;  %v1891_v15 = vld [vmem:[#allocation2 + $0x80] ss:$20 sps:$4 sm:$0xff]   ;;  %v1897_v19 = vld [vmem:[#allocation2 + $0xa8] ss:$20 sps:$4 sm:$0xff]  }
  0x18   :  { %1225 = vmatpush1.bf16.msra.mxu0 %v1878_v6  ;;  %1348 = vmatpush1.bf16.msra.mxu1 %v1879_v7  ;;  %v1892_v16 = vld [vmem:[#allocation2 + $0xa4] ss:$20 sps:$4 sm:$0xff]   ;;  %v1894_v17 = vld [vmem:[#allocation2 + $0xac] ss:$20 sps:$4 sm:$0xff]   ;;  %v1900_v21 = vld [vmem:[#allocation2 + $0xd4] ss:$20 sps:$4 sm:$0xff]  }
  0x19   :  { %1226 = vmatprep.subr.bf16.mxu0 %v1880_v8  ;;  %1349 = vmatprep.subr.bf16.mxu1 %v1882_v9  ;;  %v1896_v18 = vld [vmem:[#allocation2 + $0xa0] ss:$20 sps:$4 sm:$0xff]   ;;  %v1902_v22 = vld [vmem:[#allocation2 + $0xc8] ss:$20 sps:$4 sm:$0xff]   ;;  %v1903_v23 = vld [vmem:[#allocation2 + $0xd0] ss:$20 sps:$4 sm:$0xff]  }
  0x1a   :  { %v1898_v20 = vld [vmem:[#allocation2 + $0xcc] ss:$20 sps:$4 sm:$0xff]   ;;  %v1904_v24 = vld [vmem:[#allocation2 + $0xf4] ss:$20 sps:$4 sm:$0xff]   ;;  %v1906_v25 = vld [vmem:[#allocation2 + $0xfc] ss:$20 sps:$4 sm:$0xff]  }
  0x1b   :  { %v1908_v26 = vld [vmem:[#allocation2 + $0xf0] ss:$20 sps:$4 sm:$0xff]   ;;  %v1909_v27 = vld [vmem:[#allocation2 + $0xf8] ss:$20 sps:$4 sm:$0xff]   ;;  %v1915_v31 = vld [vmem:[#allocation2 + $0x120] ss:$20 sps:$4 sm:$0xff]  }
  0x1c   :  { %1227 = vmatpush1.bf16.msra.mxu0 %v1884_v10  ;;  %1350 = vmatpush1.bf16.msra.mxu1 %v1885_v11  ;;  %v1910_v28 = vld [vmem:[#allocation2 + $0x11c] ss:$20 sps:$4 sm:$0xff]   ;;  %v1912_v29 = vld [vmem:[#allocation2 + $0x124] ss:$20 sps:$4 sm:$0xff]   ;;  %v1918_v33 = vld [vmem:[#allocation2 + $0x14c] ss:$20 sps:$4 sm:$0xff]  }
  0x1d   :  { %1228 = vmatprep.subr.bf16.mxu0 %v1886_v12  ;;  %1351 = vmatprep.subr.bf16.mxu1 %v1888_v13  ;;  %v1914_v30 = vld [vmem:[#allocation2 + $0x118] ss:$20 sps:$4 sm:$0xff]   ;;  %v1920_v34 = vld [vmem:[#allocation2 + $0x140] ss:$20 sps:$4 sm:$0xff]   ;;  %v1921_v35 = vld [vmem:[#allocation2 + $0x148] ss:$20 sps:$4 sm:$0xff]  }
  0x1e   :  { %v1916_v32 = vld [vmem:[#allocation2 + $0x144] ss:$20 sps:$4 sm:$0xff]   ;;  %v1922_v36 = vld [vmem:[#allocation2 + $0x16c] ss:$20 sps:$4 sm:$0xff]   ;;  %v1924_v37 = vld [vmem:[#allocation2 + $0x174] ss:$20 sps:$4 sm:$0xff]  }
  0x1f   :  { %v1926_v38 = vld [vmem:[#allocation2 + $0x168] ss:$20 sps:$4 sm:$0xff]   ;;  %v1927_v39 = vld [vmem:[#allocation2 + $0x170] ss:$20 sps:$4 sm:$0xff]   ;;  %v1933_v43 = vld [vmem:[#allocation2 + $0x198] ss:$20 sps:$4 sm:$0xff]  }
  0x20   :  { %1229 = vmatpush1.bf16.msra.mxu0 %v1890_v14  ;;  %1352 = vmatpush1.bf16.msra.mxu1 %v1891_v15  ;;  %v1928_v40 = vld [vmem:[#allocation2 + $0x194] ss:$20 sps:$4 sm:$0xff]   ;;  %v1930_v41 = vld [vmem:[#allocation2 + $0x19c] ss:$20 sps:$4 sm:$0xff]   ;;  %v1936_v45 = vld [vmem:[#allocation2 + $0x1c4] ss:$20 sps:$4 sm:$0xff]  }
  0x21   :  { %1230 = vmatprep.subr.bf16.mxu0 %v1892_v16  ;;  %1353 = vmatprep.subr.bf16.mxu1 %v1894_v17  ;;  %v1932_v42 = vld [vmem:[#allocation2 + $0x190] ss:$20 sps:$4 sm:$0xff]   ;;  %v30_v46 = vld [vmem:[%s2244_s0 + $0x8] sm:$0xff]  ;;  %v1939_v49 = vld [vmem:[#allocation2 + $0x1c0] ss:$20 sps:$4 sm:$0xff]   ;;  %vm1218_vm0 = vcmask 523264  }
  0x22   :  { %v1934_v44 = vld [vmem:[#allocation2 + $0x1bc] ss:$20 sps:$4 sm:$0xff]   ;;  %v1938_v47 = vld [vmem:[#allocation2 + $0x1b8] ss:$20 sps:$4 sm:$0xff]   ;;  %v2185_v48 = vpack.c.bf16 %v30_v46, %v30_v46  ;;  %v1944_v52 = vld [vmem:[#allocation2 + $0x1e0] ss:$20 sps:$4 sm:$0xff]  }
  0x23   :  { %v1940_v50 = vld [vmem:[#allocation2 + $0x1e4] ss:$20 sps:$4 sm:$0xff]   ;;  %v1942_v51 = vld [vmem:[#allocation2 + $0x1ec] ss:$20 sps:$4 sm:$0xff]   ;;  %v1945_v53 = vld [vmem:[#allocation2 + $0x1e8] ss:$20 sps:$4 sm:$0xff]  }
  0x24   :  { %1231 = vmatpush1.bf16.msra.mxu0 %v1896_v18  ;;  %1354 = vmatpush1.bf16.msra.mxu1 %v1897_v19  ;;  %v1946_v54 = vld [vmem:[#allocation2 + $0x20c] ss:$20 sps:$4 sm:$0xff]   ;;  %v1948_v55 = vld [vmem:[#allocation2 + $0x214] ss:$20 sps:$4 sm:$0xff]   ;;  %v1951_v57 = vld [vmem:[#allocation2 + $0x210] ss:$20 sps:$4 sm:$0xff]  }
  0x25   :  { %1232 = vmatprep.subr.bf16.mxu0 %v1898_v20  ;;  %1355 = vmatprep.subr.bf16.mxu1 %v1900_v21  ;;  %v1950_v56 = vld [vmem:[#allocation2 + $0x208] ss:$20 sps:$4 sm:$0xff]   ;;  %v1956_v60 = vld [vmem:[#allocation2 + $0x230] ss:$20 sps:$4 sm:$0xff]   ;;  %v1957_v61 = vld [vmem:[#allocation2 + $0x238] ss:$20 sps:$4 sm:$0xff]  }
  0x26   :  { %1254 = vmatprep.mubr.bf16.mxu0 %v2185_v48  ;;  %1377 = vmatprep.mubr.bf16.mxu1 %v2185_v48  ;;  %v1952_v58 = vld [vmem:[#allocation2 + $0x234] ss:$20 sps:$4 sm:$0xff]   ;;  %v1954_v59 = vld [vmem:[#allocation2 + $0x23c] ss:$20 sps:$4 sm:$0xff]   ;;  %v1960_v63 = vld [vmem:[#allocation2 + $0x264] ss:$20 sps:$4 sm:$0xff]  }
  0x27   :  { %v1958_v62 = vld [vmem:[#allocation2 + $0x25c] ss:$20 sps:$4 sm:$0xff]   ;;  %v1962_v0 = vld [vmem:[#allocation2 + $0x258] ss:$20 sps:$4 sm:$0xff]   ;;  %v1963_v1 = vld [vmem:[#allocation2 + $0x260] ss:$20 sps:$4 sm:$0xff]  }
  0x28   :  { %1233 = vmatpush1.bf16.msra.mxu0 %v1902_v22  ;;  %1356 = vmatpush1.bf16.msra.mxu1 %v1903_v23  ;;  %v29_v2 = vld [vmem:[%s2244_s0] sm:$0xff]  ;;  %v1967_v7 = vld [vmem:[#allocation2 + $0x288] ss:$20 sps:$4 sm:$0xff]   ;;  %v1979_v15 = vld [vmem:[#allocation2 + $0x2d8] ss:$20 sps:$4 sm:$0xff]   ;;  %vm2149_vm1 = vmmov 0  }
  0x29   :  { %1234 = vmatprep.subr.bf16.mxu0 %v1904_v24  ;;  %1357 = vmatprep.subr.bf16.mxu1 %v1906_v25  ;;  %v1966_v3 = vld [vmem:[#allocation2 + $0x284] ss:$20 sps:$4 sm:$0xff]   ;;  %v1969_v4 = vld [vmem:[#allocation2 + $0x28c] ss:$20 sps:$4 sm:$0xff]   ;;  %v2192_v5 = vpack.c.bf16 %v29_v2, %v29_v2  ;;  %v1975_v9 = vld [vmem:[#allocation2 + $0x2b4] ss:$20 sps:$4 sm:$0xff]  }
  0x2a   :  { %v1964_v6 = vld [vmem:[#allocation2 + $0x280] ss:$20 sps:$4 sm:$0xff]   ;;  %v1970_v10 = vld [vmem:[#allocation2 + $0x2a8] ss:$20 sps:$4 sm:$0xff]   ;;  %v1973_v11 = vld [vmem:[#allocation2 + $0x2b0] ss:$20 sps:$4 sm:$0xff]  }
  0x2b   :  { %v1972_v8 = vld [vmem:[#allocation2 + $0x2ac] ss:$20 sps:$4 sm:$0xff]   ;;  %v1978_v12 = vld [vmem:[#allocation2 + $0x2d4] ss:$20 sps:$4 sm:$0xff]   ;;  %v1981_v13 = vld [vmem:[#allocation2 + $0x2dc] ss:$20 sps:$4 sm:$0xff]  }
  0x2c   :  { %1235 = vmatpush1.bf16.msra.mxu0 %v1908_v26  ;;  %1358 = vmatpush1.bf16.msra.mxu1 %v1909_v27  ;;  %v1976_v14 = vld [vmem:[#allocation2 + $0x2d0] ss:$20 sps:$4 sm:$0xff]   ;;  %v1982_v18 = vld [vmem:[#allocation2 + $0x2f8] ss:$20 sps:$4 sm:$0xff]   ;;  %v1985_v19 = vld [vmem:[#allocation2 + $0x300] ss:$20 sps:$4 sm:$0xff]  }
  0x2d   :  { %1236 = vmatprep.subr.bf16.mxu0 %v1910_v28  ;;  %1359 = vmatprep.subr.bf16.mxu1 %v1912_v29  ;;  %v1984_v16 = vld [vmem:[#allocation2 + $0x2fc] ss:$20 sps:$4 sm:$0xff]   ;;  %v1987_v17 = vld [vmem:[#allocation2 + $0x304] ss:$20 sps:$4 sm:$0xff]   ;;  %v1993_v21 = vld [vmem:[#allocation2 + $0x32c] ss:$20 sps:$4 sm:$0xff]  }
  0x2e   :  { %v1990_v20 = vld [vmem:[#allocation2 + $0x324] ss:$20 sps:$4 sm:$0xff]   ;;  %v1988_v22 = vld [vmem:[#allocation2 + $0x320] ss:$20 sps:$4 sm:$0xff]   ;;  %v1991_v23 = vld [vmem:[#allocation2 + $0x328] ss:$20 sps:$4 sm:$0xff]  }
  0x2f   :  { %v1996_v24 = vld [vmem:[#allocation2 + $0x34c] ss:$20 sps:$4 sm:$0xff]   ;;  %v1999_v25 = vld [vmem:[#allocation2 + $0x354] ss:$20 sps:$4 sm:$0xff]   ;;  %v1997_v27 = vld [vmem:[#allocation2 + $0x350] ss:$20 sps:$4 sm:$0xff]  }
  0x30   :  { %1237 = vmatpush1.bf16.msra.mxu0 %v1914_v30  ;;  %1360 = vmatpush1.bf16.msra.mxu1 %v1915_v31  ;;  %v1994_v26 = vld [vmem:[#allocation2 + $0x348] ss:$20 sps:$4 sm:$0xff]   ;;  %v2000_v31 = vld [vmem:[#allocation2 + $0x370] ss:$20 sps:$4 sm:$0xff]   ;;  %v2051_v2 = vld [vmem:[#allocation2 + $0x4b8] ss:$20 sps:$4 sm:$0xff]  }
  0x31   :  { %1238 = vmatprep.subr.bf16.mxu0 %v1916_v32  ;;  %1361 = vmatprep.subr.bf16.mxu1 %v1918_v33  ;;  %v2002_v28 = vld [vmem:[#allocation2 + $0x374] ss:$20 sps:$4 sm:$0xff]   ;;  %v2005_v29 = vld [vmem:[#allocation2 + $0x37c] ss:$20 sps:$4 sm:$0xff]   ;;  %v2003_v33 = vld [vmem:[#allocation2 + $0x378] ss:$20 sps:$4 sm:$0xff]  }
  0x32   :  { %v32_v30 = vld [vmem:[%s2244_s0 + $0x18] sm:$0xff]  ;;  %v2026_v46 = vld [vmem:[#allocation2 + $0x414] ss:$20 sps:$4 sm:$0xff]  }
  0x33   :  { %v2199_v32 = vpack.c.bf16 %v32_v30, %v32_v30 }
  0x34   :  { %1239 = vmatpush1.bf16.msra.mxu0 %v1920_v34  ;;  %1362 = vmatpush1.bf16.msra.mxu1 %v1921_v35  ;;  %v2008_v34 = vld [vmem:[#allocation2 + $0x39c] ss:$20 sps:$4 sm:$0xff]   ;;  %v2011_v35 = vld [vmem:[#allocation2 + $0x3a4] ss:$20 sps:$4 sm:$0xff]  }
  0x35   :  { %1240 = vmatprep.subr.bf16.mxu0 %v1922_v36  ;;  %1363 = vmatprep.subr.bf16.mxu1 %v1924_v37  ;;  %v2006_v36 = vld [vmem:[#allocation2 + $0x398] ss:$20 sps:$4 sm:$0xff]   ;;  %v2009_v37 = vld [vmem:[#allocation2 + $0x3a0] ss:$20 sps:$4 sm:$0xff]  }
  0x38   :  { %1241 = vmatpush1.bf16.msra.mxu0 %v1926_v38  ;;  %1364 = vmatpush1.bf16.msra.mxu1 %v1927_v39  ;;  %v2014_v38 = vld [vmem:[#allocation2 + $0x3c4] ss:$20 sps:$4 sm:$0xff]   ;;  %v2017_v39 = vld [vmem:[#allocation2 + $0x3cc] ss:$20 sps:$4 sm:$0xff]  }
  0x39   :  { %1242 = vmatprep.subr.bf16.mxu0 %v1928_v40  ;;  %1365 = vmatprep.subr.bf16.mxu1 %v1930_v41  ;;  %v2012_v40 = vld [vmem:[#allocation2 + $0x3c0] ss:$20 sps:$4 sm:$0xff]   ;;  %v2015_v41 = vld [vmem:[#allocation2 + $0x3c8] ss:$20 sps:$4 sm:$0xff]  }
  0x3c   :  { %1243 = vmatpush1.bf16.msra.mxu0 %v1932_v42  ;;  %1366 = vmatpush1.bf16.msra.mxu1 %v1933_v43  ;;  %v2020_v42 = vld [vmem:[#allocation2 + $0x3ec] ss:$20 sps:$4 sm:$0xff]   ;;  %v2023_v43 = vld [vmem:[#allocation2 + $0x3f4] ss:$20 sps:$4 sm:$0xff]  }
  0x3d   :  { %1244 = vmatprep.subr.bf16.mxu0 %v1934_v44  ;;  %1367 = vmatprep.subr.bf16.mxu1 %v1936_v45  ;;  %v2018_v44 = vld [vmem:[#allocation2 + $0x3e8] ss:$20 sps:$4 sm:$0xff]   ;;  %v2021_v45 = vld [vmem:[#allocation2 + $0x3f0] ss:$20 sps:$4 sm:$0xff]  }
  0x40   :  { %1245 = vmatpush1.bf16.msra.mxu0 %v1938_v47  ;;  %1368 = vmatpush1.bf16.msra.mxu1 %v1939_v49  ;;  %v2029_v47 = vld [vmem:[#allocation2 + $0x41c] ss:$20 sps:$4 sm:$0xff]  }
  0x41   :  { %1246 = vmatprep.subr.bf16.mxu0 %v1940_v50  ;;  %1369 = vmatprep.subr.bf16.mxu1 %v1942_v51  ;;  %v2024_v49 = vld [vmem:[#allocation2 + $0x410] ss:$20 sps:$4 sm:$0xff]   ;;  %v2027_v50 = vld [vmem:[#allocation2 + $0x418] ss:$20 sps:$4 sm:$0xff]  }
  0x42   :  { %v2032_v51 = vld [vmem:[#allocation2 + $0x43c] ss:$20 sps:$4 sm:$0xff]  }
  0x44   :  { %1247 = vmatpush1.bf16.msra.mxu0 %v1944_v52  ;;  %1370 = vmatpush1.bf16.msra.mxu1 %v1945_v53  ;;  %v2035_v52 = vld [vmem:[#allocation2 + $0x444] ss:$20 sps:$4 sm:$0xff]  }
  0x45   :  { %1248 = vmatprep.subr.bf16.mxu0 %v1946_v54  ;;  %1371 = vmatprep.subr.bf16.mxu1 %v1948_v55  ;;  %v2030_v53 = vld [vmem:[#allocation2 + $0x438] ss:$20 sps:$4 sm:$0xff]   ;;  %v2033_v54 = vld [vmem:[#allocation2 + $0x440] ss:$20 sps:$4 sm:$0xff]  }
  0x46   :  { %v2038_v55 = vld [vmem:[#allocation2 + $0x464] ss:$20 sps:$4 sm:$0xff]  }
  0x48   :  { %1249 = vmatpush1.bf16.msra.mxu0 %v1950_v56  ;;  %1372 = vmatpush1.bf16.msra.mxu1 %v1951_v57  ;;  %v2041_v56 = vld [vmem:[#allocation2 + $0x46c] ss:$20 sps:$4 sm:$0xff]  }
  0x49   :  { %1250 = vmatprep.subr.bf16.mxu0 %v1952_v58  ;;  %1373 = vmatprep.subr.bf16.mxu1 %v1954_v59  ;;  %v2036_v57 = vld [vmem:[#allocation2 + $0x460] ss:$20 sps:$4 sm:$0xff]   ;;  %v2039_v58 = vld [vmem:[#allocation2 + $0x468] ss:$20 sps:$4 sm:$0xff]  }
  0x4a   :  { %v2044_v59 = vld [vmem:[#allocation2 + $0x48c] ss:$20 sps:$4 sm:$0xff]  }
  0x4c   :  { %1251 = vmatpush1.bf16.msra.mxu0 %v1956_v60  ;;  %1374 = vmatpush1.bf16.msra.mxu1 %v1957_v61  ;;  %v2047_v60 = vld [vmem:[#allocation2 + $0x494] ss:$20 sps:$4 sm:$0xff]  }
  0x4d   :  { %1252 = vmatprep.subr.bf16.mxu0 %v1958_v62  ;;  %1375 = vmatprep.subr.bf16.mxu1 %v1960_v63  ;;  %v2042_v61 = vld [vmem:[#allocation2 + $0x488] ss:$20 sps:$4 sm:$0xff]   ;;  %v2045_v62 = vld [vmem:[#allocation2 + $0x490] ss:$20 sps:$4 sm:$0xff]  }
  0x4e   :  { %v2050_v63 = vld [vmem:[#allocation2 + $0x4b4] ss:$20 sps:$4 sm:$0xff]  }
  0x50   :  { %1253 = vmatpush1.bf16.msra.mxu0 %v1962_v0  ;;  %1376 = vmatpush1.bf16.msra.mxu1 %v1963_v1  ;;  %v2053_v0 = vld [vmem:[#allocation2 + $0x4bc] ss:$20 sps:$4 sm:$0xff]  }
  0x51   :  { %1263 = vmatprep.subr.bf16.mxu0 %v1966_v3  ;;  %1386 = vmatprep.subr.bf16.mxu1 %v1969_v4  ;;  %v2048_v1 = vld [vmem:[#allocation2 + $0x4b0] ss:$20 sps:$4 sm:$0xff]  }
  0x52   :  { %v2056_v3 = vld [vmem:[#allocation2 + $0x4dc] ss:$20 sps:$4 sm:$0xff]   ;;  %v2059_v4 = vld [vmem:[#allocation2 + $0x4e4] ss:$20 sps:$4 sm:$0xff]  }
  0x53   :  { %1255 = vmatmul.mubr.bf16.vlgmr.msra.gmra.mrb[0].mxu0 %v2192_v5  ;;  %1378 = vmatmul.mubr.bf16.vlgmr.msra.gmra.mrb[0].mxu1 %v2192_v5 }
  0x54   :  { %1264 = vmatpush1.bf16.msra.mxu0 %v1964_v6  ;;  %1387 = vmatpush1.bf16.msra.mxu1 %v1967_v7  ;;  %v2054_v6 = vld [vmem:[#allocation2 + $0x4d8] ss:$20 sps:$4 sm:$0xff]   ;;  %v2057_v7 = vld [vmem:[#allocation2 + $0x4e0] ss:$20 sps:$4 sm:$0xff]  }
  0x55   :  { %1265 = vmatprep.subr.bf16.mxu0 %v1972_v8  ;;  %1388 = vmatprep.subr.bf16.mxu1 %v1975_v9  ;;  %v2062_v8 = vld [vmem:[#allocation2 + $0x504] ss:$20 sps:$4 sm:$0xff]   ;;  %v31_v9 = vld [vmem:[%s2244_s0 + $0x10] sm:$0xff] }
  0x56   :  { %1295 = vmatprep.mubr.bf16.mxu0 %v2199_v32  ;;  %1418 = vmatprep.mubr.bf16.mxu1 %v2199_v32 }
  0x58   :  { %1266 = vmatpush1.bf16.msra.mxu0 %v1970_v10  ;;  %1389 = vmatpush1.bf16.msra.mxu1 %v1973_v11  ;;  %v2065_v10 = vld [vmem:[#allocation2 + $0x50c] ss:$20 sps:$4 sm:$0xff]  }
  0x59   :  { %1267 = vmatprep.subr.bf16.mxu0 %v1978_v12  ;;  %1390 = vmatprep.subr.bf16.mxu1 %v1981_v13  ;;  %v2060_v11 = vld [vmem:[#allocation2 + $0x500] ss:$20 sps:$4 sm:$0xff]   ;;  %v2063_v12 = vld [vmem:[#allocation2 + $0x508] ss:$20 sps:$4 sm:$0xff]   ;;  %v2206_v13 = vpack.c.bf16 %v31_v9, %v31_v9 }
  0x5c   :  { %1268 = vmatpush1.bf16.msra.mxu0 %v1976_v14  ;;  %1391 = vmatpush1.bf16.msra.mxu1 %v1979_v15  ;;  %v2068_v14 = vld [vmem:[#allocation2 + $0x52c] ss:$20 sps:$4 sm:$0xff]   ;;  %v2071_v15 = vld [vmem:[#allocation2 + $0x534] ss:$20 sps:$4 sm:$0xff]  }
  0x5d   :  { %1269 = vmatprep.subr.bf16.mxu0 %v1984_v16  ;;  %1392 = vmatprep.subr.bf16.mxu1 %v1987_v17  ;;  %v2066_v16 = vld [vmem:[#allocation2 + $0x528] ss:$20 sps:$4 sm:$0xff]   ;;  %v2069_v17 = vld [vmem:[#allocation2 + $0x530] ss:$20 sps:$4 sm:$0xff]  }
  0x60   :  { %1270 = vmatpush1.bf16.msra.mxu0 %v1982_v18  ;;  %1393 = vmatpush1.bf16.msra.mxu1 %v1985_v19  ;;  %v2074_v18 = vld [vmem:[#allocation2 + $0x554] ss:$20 sps:$4 sm:$0xff]   ;;  %v2077_v19 = vld [vmem:[#allocation2 + $0x55c] ss:$20 sps:$4 sm:$0xff]  }
  0x61   :  { %1271 = vmatprep.subr.bf16.mxu0 %v1990_v20  ;;  %1394 = vmatprep.subr.bf16.mxu1 %v1993_v21  ;;  %v2147_v20 = vmov 0   ;;  %v2072_v21 = vld [vmem:[#allocation2 + $0x550] ss:$20 sps:$4 sm:$0xff]  }
  0x64   :  { %1272 = vmatpush1.bf16.msra.mxu0 %v1988_v22  ;;  %1395 = vmatpush1.bf16.msra.mxu1 %v1991_v23  ;;  %v2075_v22 = vld [vmem:[#allocation2 + $0x558] ss:$20 sps:$4 sm:$0xff]   ;;  %v2080_v23 = vld [vmem:[#allocation2 + $0x57c] ss:$20 sps:$4 sm:$0xff]  }
  0x65   :  { %1273 = vmatprep.subr.bf16.mxu0 %v1996_v24  ;;  %1396 = vmatprep.subr.bf16.mxu1 %v1999_v25  ;;  %v2083_v24 = vld [vmem:[#allocation2 + $0x584] ss:$20 sps:$4 sm:$0xff]  }
  0x66   :  { %v2078_v25 = vld [vmem:[#allocation2 + $0x578] ss:$20 sps:$4 sm:$0xff]  }
  0x68   :  { %1274 = vmatpush1.bf16.msra.mxu0 %v1994_v26  ;;  %1397 = vmatpush1.bf16.msra.mxu1 %v1997_v27  ;;  %v2081_v26 = vld [vmem:[#allocation2 + $0x580] ss:$20 sps:$4 sm:$0xff]  }
  0x69   :  { %1275 = vmatprep.subr.bf16.mxu0 %v2002_v28  ;;  %1398 = vmatprep.subr.bf16.mxu1 %v2005_v29  ;;  %v33_v27 = vld [vmem:[%s2244_s0 + $0x20] sm:$0xff] }
  0x6a   :  { %v2084_v28 = vld [vmem:[#allocation2 + $0x150] ss:$20 sps:$4 sm:$0xff]   ;;  %v2213_v30 = vpack.c.bf16 %v33_v27, %v33_v27 }
  0x6b   :  { %v2086_v29 = vld [vmem:[#allocation2 + $0x3d0] ss:$20 sps:$4 sm:$0xff]  }
  0x6c   :  { %1276 = vmatpush1.bf16.msra.mxu0 %v2000_v31  ;;  %1399 = vmatpush1.bf16.msra.mxu1 %v2003_v33  ;;  %v2085_v31 = vld [vmem:[#allocation2 + $0x10] ss:$20 sps:$4 sm:$0xff]  }
  0x6d   :  { %1277 = vmatprep.subr.bf16.mxu0 %v2008_v34  ;;  %1400 = vmatprep.subr.bf16.mxu1 %v2011_v35  ;;  %v2087_v33 = vld [vmem:[#allocation2 + $0x290] ss:$20 sps:$4 sm:$0xff]   ;;  %v2088_v34 = vld [vmem:[#allocation2 + $0x178] ss:$20 sps:$4 sm:$0xff]  }
  0x6e   :  { %v2090_v35 = vld [vmem:[#allocation2 + $0x3f8] ss:$20 sps:$4 sm:$0xff]  }
  0x70   :  { %1278 = vmatpush1.bf16.msra.mxu0 %v2006_v36  ;;  %1401 = vmatpush1.bf16.msra.mxu1 %v2009_v37  ;;  %v2089_v36 = vld [vmem:[#allocation2 + $0x38] ss:$20 sps:$4 sm:$0xff]  }
  0x71   :  { %1279 = vmatprep.subr.bf16.mxu0 %v2014_v38  ;;  %1402 = vmatprep.subr.bf16.mxu1 %v2017_v39  ;;  %v2091_v37 = vld [vmem:[#allocation2 + $0x2b8] ss:$20 sps:$4 sm:$0xff]   ;;  %v2092_v38 = vld [vmem:[#allocation2 + $0x1a0] ss:$20 sps:$4 sm:$0xff]  }
  0x72   :  { %v2094_v39 = vld [vmem:[#allocation2 + $0x420] ss:$20 sps:$4 sm:$0xff]  }
  0x74   :  { %1280 = vmatpush1.bf16.msra.mxu0 %v2012_v40  ;;  %1403 = vmatpush1.bf16.msra.mxu1 %v2015_v41  ;;  %v2093_v40 = vld [vmem:[#allocation2 + $0x60] ss:$20 sps:$4 sm:$0xff]  }
  0x75   :  { %1281 = vmatprep.subr.bf16.mxu0 %v2020_v42  ;;  %1404 = vmatprep.subr.bf16.mxu1 %v2023_v43  ;;  %v2095_v41 = vld [vmem:[#allocation2 + $0x2e0] ss:$20 sps:$4 sm:$0xff]   ;;  %v2096_v42 = vld [vmem:[#allocation2 + $0x1c8] ss:$20 sps:$4 sm:$0xff]  }
  0x76   :  { %v2098_v43 = vld [vmem:[#allocation2 + $0x448] ss:$20 sps:$4 sm:$0xff]  }
  0x78   :  { %1282 = vmatpush1.bf16.msra.mxu0 %v2018_v44  ;;  %1405 = vmatpush1.bf16.msra.mxu1 %v2021_v45  ;;  %v2097_v44 = vld [vmem:[#allocation2 + $0x88] ss:$20 sps:$4 sm:$0xff]  }
  0x79   :  { %1283 = vmatprep.subr.bf16.mxu0 %v2026_v46  ;;  %1406 = vmatprep.subr.bf16.mxu1 %v2029_v47  ;;  %v2099_v45 = vld [vmem:[#allocation2 + $0x308] ss:$20 sps:$4 sm:$0xff]   ;;  %v2100_v46 = vld [vmem:[#allocation2 + $0x1f0] ss:$20 sps:$4 sm:$0xff]  }
  0x7a   :  { %v2102_v47 = vld [vmem:[#allocation2 + $0x470] ss:$20 sps:$4 sm:$0xff]  }
  0x7c   :  { %1284 = vmatpush1.bf16.msra.mxu0 %v2024_v49  ;;  %1407 = vmatpush1.bf16.msra.mxu1 %v2027_v50  ;;  %v2104_v49 = vld [vmem:[#allocation2 + $0x218] ss:$20 sps:$4 sm:$0xff]  }
  0x7d   :  { %1285 = vmatprep.subr.bf16.mxu0 %v2032_v51  ;;  %1408 = vmatprep.subr.bf16.mxu1 %v2035_v52  ;;  %v2106_v50 = vld [vmem:[#allocation2 + $0x498] ss:$20 sps:$4 sm:$0xff]  }
  0x7e   :  { %v2105_v51 = vld [vmem:[#allocation2 + $0xd8] ss:$20 sps:$4 sm:$0xff]  }
  0x7f   :  { %v2107_v52 = vld [vmem:[#allocation2 + $0x358] ss:$20 sps:$4 sm:$0xff]  }
  0x80   :  { %1286 = vmatpush1.bf16.msra.mxu0 %v2030_v53  ;;  %1409 = vmatpush1.bf16.msra.mxu1 %v2033_v54  ;;  %v2108_v53 = vld [vmem:[#allocation2 + $0x240] ss:$20 sps:$4 sm:$0xff]  }
  0x81   :  { %1287 = vmatprep.subr.bf16.mxu0 %v2038_v55  ;;  %1410 = vmatprep.subr.bf16.mxu1 %v2041_v56  ;;  %v2110_v54 = vld [vmem:[#allocation2 + $0x4c0] ss:$20 sps:$4 sm:$0xff]  }
  0x82   :  { %v2109_v55 = vld [vmem:[#allocation2 + $0x100] ss:$20 sps:$4 sm:$0xff]  }
  0x83   :  { %v2111_v56 = vld [vmem:[#allocation2 + $0x380] ss:$20 sps:$4 sm:$0xff]  }
  0x84   :  { %1288 = vmatpush1.bf16.msra.mxu0 %v2036_v57  ;;  %1411 = vmatpush1.bf16.msra.mxu1 %v2039_v58  ;;  %v2112_v57 = vld [vmem:[#allocation2 + $0x268] ss:$20 sps:$4 sm:$0xff]  }
  0x85   :  { %1289 = vmatprep.subr.bf16.mxu0 %v2044_v59  ;;  %1412 = vmatprep.subr.bf16.mxu1 %v2047_v60  ;;  %v2114_v58 = vld [vmem:[#allocation2 + $0x4e8] ss:$20 sps:$4 sm:$0xff]  }
  0x86   :  { %v2113_v59 = vld [vmem:[#allocation2 + $0x128] ss:$20 sps:$4 sm:$0xff]  }
  0x87   :  { %v2115_v60 = vld [vmem:[#allocation2 + $0x3a8] ss:$20 sps:$4 sm:$0xff]  }
  0x88   :  { %1290 = vmatpush1.bf16.msra.mxu0 %v2042_v61  ;;  %1413 = vmatpush1.bf16.msra.mxu1 %v2045_v62  ;;  %v2116_v61 = vld [vmem:[#allocation2 + $0x510] ss:$20 sps:$4 sm:$0xff]   ;;  %v2148_v62 = vmov 0.0  }
  0x89   :  { %1291 = vmatprep.subr.bf16.mxu0 %v2050_v63  ;;  %1414 = vmatprep.subr.bf16.mxu1 %v2053_v0  ;;  %v2117_v63 = vld [vmem:[#allocation2 + $0x538] ss:$20 sps:$4 sm:$0xff]   ;;  %v2118_v0 = vld [vmem:[#allocation2 + $0x560] ss:$20 sps:$4 sm:$0xff]  }
  0x8c   :  { %1292 = vmatpush1.bf16.msra.mxu0 %v2048_v1  ;;  %1415 = vmatpush1.bf16.msra.mxu1 %v2051_v2  ;;  %v2119_v1 = vld [vmem:[#allocation2 + $0x588] ss:$20 sps:$4 sm:$0xff]   ;;  %v257_v2 = vlaneseq }
  0x8d   :  { %1293 = vmatprep.subr.bf16.mxu0 %v2056_v3  ;;  %1416 = vmatprep.subr.bf16.mxu1 %v2059_v4 }
  0x8e   :  { %v258_v3 = vshrl.u32 %v257_v2, 7 }
  0x90   :  { %1294 = vmatpush1.bf16.msra.mxu0 %v2054_v6  ;;  %1417 = vmatpush1.bf16.msra.mxu1 %v2057_v7  ;;  %v267_v4 = vsub.s32 2, %v258_v3  ;;  %v255_v6 = vld [vmem:[%s2246_s2] sm:$0x1f]  ;;  %v263_v7 = vsub.s32 1, %v258_v3 }
  0x91   :  { %1304 = vmatprep.subr.bf16.mxu0 %v2062_v8  ;;  %1427 = vmatprep.subr.bf16.mxu1 %v2065_v10  ;;  %v271_v8 = vsub.s32 3, %v258_v3 }
  0x92   :  { %v268_v10 = vrot.slane %v255_v6, %v267_v4 }
  0x93   :  { %1296 = vmatmul.mubr.bf16.vlgmr.msra.gmra.mrb[0].mxu0 %v2206_v13  ;;  %1419 = vmatmul.mubr.bf16.vlgmr.msra.gmra.mrb[0].mxu1 %v2206_v13 }
  0x94   :  { %1305 = vmatpush1.bf16.msra.mxu0 %v2060_v11  ;;  %1428 = vmatpush1.bf16.msra.mxu1 %v2063_v12  ;;  %v264_v11 = vrot.slane %v255_v6, %v263_v7  ;;  %v272_v12 = vrot.slane %v255_v6, %v271_v8 }
  0x95   :  { %1306 = vmatprep.subr.bf16.mxu0 %v2068_v14  ;;  %1429 = vmatprep.subr.bf16.mxu1 %v2071_v15 }
  0x96   :  { %1336 = vmatprep.mubr.bf16.mxu0 %v2147_v20  ;;  %1459 = vmatprep.mubr.bf16.mxu1 %v2147_v20 }
  0x98   :  { %1307 = vmatpush1.bf16.msra.mxu0 %v2066_v16  ;;  %1430 = vmatpush1.bf16.msra.mxu1 %v2069_v17 }
  0x99   :  { %1308 = vmatprep.subr.bf16.mxu0 %v2074_v18  ;;  %1431 = vmatprep.subr.bf16.mxu1 %v2077_v19 }
  0x9c   :  { %1309 = vmatpush1.bf16.msra.mxu0 %v2072_v21  ;;  %1432 = vmatpush1.bf16.msra.mxu1 %v2075_v22 }
  0x9d   :  { %1310 = vmatprep.subr.bf16.mxu0 %v2080_v23  ;;  %1433 = vmatprep.subr.bf16.mxu1 %v2083_v24 }
  0xa0   :  { %1311 = vmatpush1.bf16.msra.mxu0 %v2078_v25  ;;  %1434 = vmatpush1.bf16.msra.mxu1 %v2081_v26  ;;  %v275_v25 = vsub.s32 4, %v258_v3 }
  0xa1   :  { %1781 = vmatprep.subr.bf16.mxu0 %v2084_v28  ;;  %1803 = vmatprep.subr.bf16.mxu1 %v2086_v29 }
  0xa2   :  { %v276_v27 = vrot.slane %v255_v6, %v275_v25 }
  0xa3   :  { %1778 = vmatmul.mubr.msk.bf16.vlgmr.msra.gmra.mrb[0].mxu0 %vm1218_vm0, %v2213_v30  ;;  %1779 = vmatmul.mubr.msk.bf16.vlgmr.msra.gmra.mrb[0].mxu1 %vm1218_vm0, %v2213_v30 }
  0xa4   :  { %1782 = vmatpush3.bf16.msra.mxu0 %v2085_v31  ;;  %1804 = vmatpush3.bf16.msra.mxu1 %v2087_v33 }
  0xa5   :  { %1783 = vmatprep.subr.bf16.mxu0 %v2088_v34  ;;  %1805 = vmatprep.subr.bf16.mxu1 %v2090_v35 }
  0xa6   :  { %1500 = vmatprep.mubr.bf16.mxu0 %v2185_v48  ;;  %1540 = vmatprep.mubr.bf16.mxu1 %v2199_v32  ;;  %v2101_v48 = vld [vmem:[#allocation2 + $0xb0] ss:$20 sps:$4 sm:$0xff]  }
  0xa7   :  { %v2103_v32 = vld [vmem:[#allocation2 + $0x330] ss:$20 sps:$4 sm:$0xff]  }
  0xa8   :  { %1784 = vmatpush3.bf16.msra.mxu0 %v2089_v36  ;;  %1806 = vmatpush3.bf16.msra.mxu1 %v2091_v37 }
  0xa9   :  { %1785 = vmatprep.subr.bf16.mxu0 %v2092_v38  ;;  %1807 = vmatprep.subr.bf16.mxu1 %v2094_v39 }
  0xac   :  { %1786 = vmatpush3.bf16.msra.mxu0 %v2093_v40  ;;  %1808 = vmatpush3.bf16.msra.mxu1 %v2095_v41 }
  0xad   :  { %1787 = vmatprep.subr.bf16.mxu0 %v2096_v42  ;;  %1809 = vmatprep.subr.bf16.mxu1 %v2098_v43 }
  0xb0   :  { %1788 = vmatpush3.bf16.msra.mxu0 %v2097_v44  ;;  %1810 = vmatpush3.bf16.msra.mxu1 %v2099_v45 }
  0xb1   :  { %1789 = vmatprep.subr.bf16.mxu0 %v2100_v46  ;;  %1811 = vmatprep.subr.bf16.mxu1 %v2102_v47 }
  0xb4   :  { %1790 = vmatpush3.bf16.msra.mxu0 %v2101_v48  ;;  %1812 = vmatpush3.bf16.msra.mxu1 %v2103_v32 }
  0xb5   :  { %1791 = vmatprep.subr.bf16.mxu0 %v2104_v49  ;;  %1813 = vmatprep.subr.bf16.mxu1 %v2106_v50 }
  0xb8   :  { %1792 = vmatpush3.bf16.msra.mxu0 %v2105_v51  ;;  %1814 = vmatpush3.bf16.msra.mxu1 %v2107_v52 }
  0xb9   :  { %1793 = vmatprep.subr.bf16.mxu0 %v2108_v53  ;;  %1815 = vmatprep.subr.bf16.mxu1 %v2110_v54 }
  0xbc   :  { %1794 = vmatpush3.bf16.msra.mxu0 %v2109_v55  ;;  %1816 = vmatpush3.bf16.msra.mxu1 %v2111_v56 }
  0xbd   :  { %1795 = vmatprep.subr.bf16.mxu0 %v2112_v57  ;;  %1817 = vmatprep.subr.bf16.mxu1 %v2114_v58 }
  0xc0   :  { %1796 = vmatpush3.bf16.msra.mxu0 %v2113_v59  ;;  %1818 = vmatpush3.bf16.msra.mxu1 %v2115_v60 }
  0xc1   :  { %1830 = vmatprep.subr.bf16.mxu0 %v2148_v62 }
  0xc3   :  { %1501 = vmatmul.mubr.bf16.vlgmr.msra.gmra.mrb[4].mxu0 %v2192_v5  ;;  %1541 = vmatmul.mubr.bf16.vlgmr.msra.gmra.mrb[4].mxu1 %v2206_v13  ;;  %v259_v5 = vsub.s32 0, %v258_v3 }
  0xc4   :  { %1831 = vmatpush3.bf16.msra.mxu0 %v2116_v61  ;;  %1838 = vmatprep.mubr.msk.bf16.mxu0 %vm2149_vm1, %v2148_v62 }
  0xc5   :  { %1832 = vmatprep.subr.bf16.mxu0 %v2148_v62  ;;  %v260_v9 = vrot.slane %v255_v6, %v259_v5 }
  0xc8   :  { %1833 = vmatpush3.bf16.msra.mxu0 %v2117_v63 }
  0xc9   :  { %1834 = vmatprep.subr.bf16.mxu0 %v2148_v62 }
  0xcc   :  { %1835 = vmatpush3.bf16.msra.mxu0 %v2118_v0 }
  0xcd   :  { %1836 = vmatprep.subr.bf16.mxu0 %v2148_v62 }
  0xd0   :  { %1837 = vmatpush3.bf16.msra.mxu0 %v2119_v1 }
  0xd3   :  { %1839 = vmatmul.mubr.msk.bf16.vlgmr.msra.gmra.mrb[8].mxu0 %vm1218_vm0, %v2213_v30 }
 0x176   :  { %v1338_v13 = vpop.f32.mrb[0].mxu0  ;;  %v1461_v14 = vpop.f32.mrb[0].mxu1 }
 0x177   :  { %v1842_v15 = vadd.f32 %v1338_v13, %v260_v9  ;;  %v1844_v16 = vadd.f32 %v1461_v14, %v268_v10  ;;  %v1340_v17 = vpop.f32.mrb[1].mxu0  ;;  %v1463_v18 = vpop.f32.mrb[1].mxu1 }
 0x178   :  { %v1843_v19 = vadd.f32 %v1340_v17, %v264_v11  ;;  %v1845_v20 = vadd.f32 %v1463_v18, %v272_v12  ;;  %v1342_v21 = vpop.f32.mrb[2].mxu0  ;;  %v1465_v22 = vpop.f32.mrb[2].mxu1 }
 0x179   :  { %1588 = vst [vmem:[%s2247_s3] sm:$0xff] %v1842_v15  ;;  %1590 = vst [vmem:[%s2247_s3 + $0x10] sm:$0xff] %v1844_v16  ;;  %v1343_v23 = vpop.f32.mrb[3].mxu0  ;;  %v1466_v24 = vpop.f32.mrb[3].mxu1 }
 0x17a   :  { %1589 = vst [vmem:[%s2247_s3 + $0x8] sm:$0xff] %v1843_v19  ;;  %1591 = vst [vmem:[%s2247_s3 + $0x18] sm:$0xff] %v1845_v20 }
 0x196   :  { %v1797_v26 = vpop.f32.mrb[4].mxu0  ;;  %v1819_v28 = vpop.f32.mrb[4].mxu1 }
 0x197   :  { %v1798_v29 = vpop.f32.mrb[5].mxu0  ;;  %v1820_v30 = vpop.f32.mrb[5].mxu1 }
 0x198   :  { %v1799_v31 = vadd.f32 %v1798_v29, %v1797_v26  ;;  %v1800_v33 = vpop.f32.mrb[6].mxu0  ;;  %v1821_v34 = vadd.f32 %v1820_v30, %v1819_v28  ;;  %v1822_v35 = vpop.f32.mrb[6].mxu1 }
 0x199   :  { %v1801_v36 = vpop.f32.mrb[7].mxu0  ;;  %v1823_v37 = vpop.f32.mrb[7].mxu1 }
 0x19a   :  { %v1503_v38 = vadd.f32 %v1799_v31, %v276_v27 }
 0x19c   :  { %v1543_v39 = vadd.f32 %v1821_v34, %v1503_v38 }
 0x1a6   :  { %v1582_v40 = vpop.f32.mrb[8].mxu0 }
 0x1a7   :  { %v1583_v41 = vadd.f32 %v1582_v40, %v1543_v39  ;;  %v1840_v42 = vpop.f32.mrb[9].mxu0 }
 0x1a8   :  { %v1585_v43 = vpop.f32.mrb[10].mxu0 }
 0x1a9   :  { %1592 = vst.msk [vmem:[%s2247_s3 + $0x20] sm:$0xff] %vm1218_vm0, %v1583_v41  ;;  %v1841_v44 = vpop.f32.mrb[11].mxu0 }
 0x1aa   :  { %1597 = vsyncpa [#allocation3], 1 }

// kernel: fcn_forward.1
= control target key start
LH: loop header
LB: loop body
LE: loop exit
PB: predicated region body
PF: predicated region fallthrough
CT: control target
= control target key end

     0   :  { %8 = vsyncpa [#allocation3], 0  ;;  %s2144_s12 = smov [#allocation2]   ;;  %s2244_s0 = inlined_call_operand.vmem [shape: f32[8,576], index: 0, kind: input, shape index: {}]   ;;  %s2245_s1 = inlined_call_operand.hbm [shape: bf16[576,576], index: 1, kind: input, shape index: {}]   ;;  %s2246_s2 = inlined_call_operand.vmem [shape: f32[1,576], index: 2, kind: input, shape index: {}]   ;;  %s2247_s3 = inlined_call_operand.vmem [shape: f32[8,576], index: 3, kind: output, shape index: {}]  }
   0x1   :  { %s16_s13 = sshll.u32 %s2144_s12, 4  ;;  %s2120_s16 = scalar_lea.hbm %s2245_s1, 23040  ;;  %s17_s13 = int_to_ptr.vmem [resolvable:$true] %s16_s13 }
   0x2   :  { %p2121_p0 = scmp.ne.s32.totalorder %s2245_s1, %s2120_s16  ;;  %p2124_p1 = scmp.lt.u32.totalorder %s2120_s16, %s2245_s1 }
   0x4   :  { %p2126_p2 = pnand %p2124_p1, %p2121_p0 }
   0x6   :  { %2129 = shalt.err (!%p2126_p2)
}
   0x7   :  { %s2130_s21 = scalar_lea.vmem %s17_s13, 23040  ;;  %p2135_p4 = scmp.lt.s32.totalorder %s17_s13, %s17_s13 }
   0x8   :  { %p2131_p3 = scmp.ne.s32.totalorder %s17_s13, %s2130_s21  ;;  %p2136_p5 = scmp.lt.s32.totalorder %s2130_s21, %s2130_s21 }
   0xa   :  { %p2137_p6 = por %p2136_p5, %p2135_p4 }
   0xc   :  { %p2138_p7 = pnand %p2137_p6, %p2131_p3 }
   0xe   :  { %2141 = shalt.err (!%p2138_p7)
}
   0xf   :  { %s2145_s22 = smov 320   ;;  %s2146_s23 = smov 20  }
  0x10   :  { %22 = dma.hbm_to_vmem [thread:$0]  %s2245_s1, 23040, %s17_s13, [#allocation3], %s2145_s22, %s2145_s22, %s2146_s23  }
  0x11   :  { %2142 = dma.done.wait [#allocation3], 23040  }
  0x12   :  { %2143 = vsyncadd [#allocation3], 4294944256  ;;  %v1868_v0 = vld [vmem:[#allocation2 + $0x4] ss:$20 sps:$4 sm:$0xff]   ;;  %v1870_v1 = vld [vmem:[#allocation2 + $0xc] ss:$20 sps:$4 sm:$0xff]  }
  0x13   :  { %1222 = vmatprep.subr.bf16.mxu0 %v1868_v0  ;;  %v1872_v2 = vld [vmem:[#allocation2] ss:$20 sps:$4 sm:$0xff]   ;;  %v1873_v3 = vld [vmem:[#allocation2 + $0x8] ss:$20 sps:$4 sm:$0xff]   ;;  %1345 = vmatprep.subr.bf16.mxu1 %v1870_v1  ;;  %v1879_v7 = vld [vmem:[#allocation2 + $0x30] ss:$20 sps:$4 sm:$0xff]  }
  0x14   :  { %v1874_v4 = vld [vmem:[#allocation2 + $0x2c] ss:$20 sps:$4 sm:$0xff]   ;;  %1223 = vmatpush1.bf16.msra.mxu0 %v1872_v2  ;;  %1346 = vmatpush1.bf16.msra.mxu1 %v1873_v3  ;;  %v1876_v5 = vld [vmem:[#allocation2 + $0x34] ss:$20 sps:$4 sm:$0xff]   ;;  %v1882_v9 = vld [vmem:[#allocation2 + $0x5c] ss:$20 sps:$4 sm:$0xff]  }
  0x15   :  { %v1878_v6 = vld [vmem:[#allocation2 + $0x28] ss:$20 sps:$4 sm:$0xff]   ;;  %1224 = vmatprep.subr.bf16.mxu0 %v1874_v4  ;;  %1347 = vmatprep.subr.bf16.mxu1 %v1876_v5  ;;  %v1884_v10 = vld [vmem:[#allocation2 + $0x50] ss:$20 sps:$4 sm:$0xff]   ;;  %v1885_v11 = vld [vmem:[#allocation2 + $0x58] ss:$20 sps:$4 sm:$0xff]  }
  0x16   :  { %v1880_v8 = vld [vmem:[#allocation2 + $0x54] ss:$20 sps:$4 sm:$0xff]   ;;  %v1886_v12 = vld [vmem:[#allocation2 + $0x7c] ss:$20 sps:$4 sm:$0xff]   ;;  %v1888_v13 = vld [vmem:[#allocation2 + $0x84] ss:$20 sps:$4 sm:$0xff]  }
  0x17   :  { %v1890_v14 = vld [vmem:[#allocation2 + $0x78] ss:$20 sps:$4 sm:$0xff]   ;;  %v1891_v15 = vld [vmem:[#allocation2 + $0x80] ss:$20 sps:$4 sm:$0xff]   ;;  %v1897_v19 = vld [vmem:[#allocation2 + $0xa8] ss:$20 sps:$4 sm:$0xff]  }
  0x18   :  { %1225 = vmatpush1.bf16.msra.mxu0 %v1878_v6  ;;  %1348 = vmatpush1.bf16.msra.mxu1 %v1879_v7  ;;  %v1892_v16 = vld [vmem:[#allocation2 + $0xa4] ss:$20 sps:$4 sm:$0xff]   ;;  %v1894_v17 = vld [vmem:[#allocation2 + $0xac] ss:$20 sps:$4 sm:$0xff]   ;;  %v1900_v21 = vld [vmem:[#allocation2 + $0xd4] ss:$20 sps:$4 sm:$0xff]  }
  0x19   :  { %1226 = vmatprep.subr.bf16.mxu0 %v1880_v8  ;;  %1349 = vmatprep.subr.bf16.mxu1 %v1882_v9  ;;  %v1896_v18 = vld [vmem:[#allocation2 + $0xa0] ss:$20 sps:$4 sm:$0xff]   ;;  %v1902_v22 = vld [vmem:[#allocation2 + $0xc8] ss:$20 sps:$4 sm:$0xff]   ;;  %v1903_v23 = vld [vmem:[#allocation2 + $0xd0] ss:$20 sps:$4 sm:$0xff]  }
  0x1a   :  { %v1898_v20 = vld [vmem:[#allocation2 + $0xcc] ss:$20 sps:$4 sm:$0xff]   ;;  %v1904_v24 = vld [vmem:[#allocation2 + $0xf4] ss:$20 sps:$4 sm:$0xff]   ;;  %v1906_v25 = vld [vmem:[#allocation2 + $0xfc] ss:$20 sps:$4 sm:$0xff]  }
  0x1b   :  { %v1908_v26 = vld [vmem:[#allocation2 + $0xf0] ss:$20 sps:$4 sm:$0xff]   ;;  %v1909_v27 = vld [vmem:[#allocation2 + $0xf8] ss:$20 sps:$4 sm:$0xff]   ;;  %v1915_v31 = vld [vmem:[#allocation2 + $0x120] ss:$20 sps:$4 sm:$0xff]  }
  0x1c   :  { %1227 = vmatpush1.bf16.msra.mxu0 %v1884_v10  ;;  %1350 = vmatpush1.bf16.msra.mxu1 %v1885_v11  ;;  %v1910_v28 = vld [vmem:[#allocation2 + $0x11c] ss:$20 sps:$4 sm:$0xff]   ;;  %v1912_v29 = vld [vmem:[#allocation2 + $0x124] ss:$20 sps:$4 sm:$0xff]   ;;  %v1918_v33 = vld [vmem:[#allocation2 + $0x14c] ss:$20 sps:$4 sm:$0xff]  }
  0x1d   :  { %1228 = vmatprep.subr.bf16.mxu0 %v1886_v12  ;;  %1351 = vmatprep.subr.bf16.mxu1 %v1888_v13  ;;  %v1914_v30 = vld [vmem:[#allocation2 + $0x118] ss:$20 sps:$4 sm:$0xff]   ;;  %v1920_v34 = vld [vmem:[#allocation2 + $0x140] ss:$20 sps:$4 sm:$0xff]   ;;  %v1921_v35 = vld [vmem:[#allocation2 + $0x148] ss:$20 sps:$4 sm:$0xff]  }
  0x1e   :  { %v1916_v32 = vld [vmem:[#allocation2 + $0x144] ss:$20 sps:$4 sm:$0xff]   ;;  %v1922_v36 = vld [vmem:[#allocation2 + $0x16c] ss:$20 sps:$4 sm:$0xff]   ;;  %v1924_v37 = vld [vmem:[#allocation2 + $0x174] ss:$20 sps:$4 sm:$0xff]  }
  0x1f   :  { %v1926_v38 = vld [vmem:[#allocation2 + $0x168] ss:$20 sps:$4 sm:$0xff]   ;;  %v1927_v39 = vld [vmem:[#allocation2 + $0x170] ss:$20 sps:$4 sm:$0xff]   ;;  %v1933_v43 = vld [vmem:[#allocation2 + $0x198] ss:$20 sps:$4 sm:$0xff]  }
  0x20   :  { %1229 = vmatpush1.bf16.msra.mxu0 %v1890_v14  ;;  %1352 = vmatpush1.bf16.msra.mxu1 %v1891_v15  ;;  %v1928_v40 = vld [vmem:[#allocation2 + $0x194] ss:$20 sps:$4 sm:$0xff]   ;;  %v1930_v41 = vld [vmem:[#allocation2 + $0x19c] ss:$20 sps:$4 sm:$0xff]   ;;  %v1936_v45 = vld [vmem:[#allocation2 + $0x1c4] ss:$20 sps:$4 sm:$0xff]  }
  0x21   :  { %1230 = vmatprep.subr.bf16.mxu0 %v1892_v16  ;;  %1353 = vmatprep.subr.bf16.mxu1 %v1894_v17  ;;  %v1932_v42 = vld [vmem:[#allocation2 + $0x190] ss:$20 sps:$4 sm:$0xff]   ;;  %v30_v46 = vld [vmem:[%s2244_s0 + $0x8] sm:$0xff]  ;;  %v1939_v49 = vld [vmem:[#allocation2 + $0x1c0] ss:$20 sps:$4 sm:$0xff]   ;;  %vm1218_vm0 = vcmask 523264  }
  0x22   :  { %v1934_v44 = vld [vmem:[#allocation2 + $0x1bc] ss:$20 sps:$4 sm:$0xff]   ;;  %v1938_v47 = vld [vmem:[#allocation2 + $0x1b8] ss:$20 sps:$4 sm:$0xff]   ;;  %v2185_v48 = vpack.c.bf16 %v30_v46, %v30_v46  ;;  %v1944_v52 = vld [vmem:[#allocation2 + $0x1e0] ss:$20 sps:$4 sm:$0xff]  }
  0x23   :  { %v1940_v50 = vld [vmem:[#allocation2 + $0x1e4] ss:$20 sps:$4 sm:$0xff]   ;;  %v1942_v51 = vld [vmem:[#allocation2 + $0x1ec] ss:$20 sps:$4 sm:$0xff]   ;;  %v1945_v53 = vld [vmem:[#allocation2 + $0x1e8] ss:$20 sps:$4 sm:$0xff]  }
  0x24   :  { %1231 = vmatpush1.bf16.msra.mxu0 %v1896_v18  ;;  %1354 = vmatpush1.bf16.msra.mxu1 %v1897_v19  ;;  %v1946_v54 = vld [vmem:[#allocation2 + $0x20c] ss:$20 sps:$4 sm:$0xff]   ;;  %v1948_v55 = vld [vmem:[#allocation2 + $0x214] ss:$20 sps:$4 sm:$0xff]   ;;  %v1951_v57 = vld [vmem:[#allocation2 + $0x210] ss:$20 sps:$4 sm:$0xff]  }
  0x25   :  { %1232 = vmatprep.subr.bf16.mxu0 %v1898_v20  ;;  %1355 = vmatprep.subr.bf16.mxu1 %v1900_v21  ;;  %v1950_v56 = vld [vmem:[#allocation2 + $0x208] ss:$20 sps:$4 sm:$0xff]   ;;  %v1956_v60 = vld [vmem:[#allocation2 + $0x230] ss:$20 sps:$4 sm:$0xff]   ;;  %v1957_v61 = vld [vmem:[#allocation2 + $0x238] ss:$20 sps:$4 sm:$0xff]  }
  0x26   :  { %1254 = vmatprep.mubr.bf16.mxu0 %v2185_v48  ;;  %1377 = vmatprep.mubr.bf16.mxu1 %v2185_v48  ;;  %v1952_v58 = vld [vmem:[#allocation2 + $0x234] ss:$20 sps:$4 sm:$0xff]   ;;  %v1954_v59 = vld [vmem:[#allocation2 + $0x23c] ss:$20 sps:$4 sm:$0xff]   ;;  %v1960_v63 = vld [vmem:[#allocation2 + $0x264] ss:$20 sps:$4 sm:$0xff]  }
  0x27   :  { %v1958_v62 = vld [vmem:[#allocation2 + $0x25c] ss:$20 sps:$4 sm:$0xff]   ;;  %v1962_v0 = vld [vmem:[#allocation2 + $0x258] ss:$20 sps:$4 sm:$0xff]   ;;  %v1963_v1 = vld [vmem:[#allocation2 + $0x260] ss:$20 sps:$4 sm:$0xff]  }
  0x28   :  { %1233 = vmatpush1.bf16.msra.mxu0 %v1902_v22  ;;  %1356 = vmatpush1.bf16.msra.mxu1 %v1903_v23  ;;  %v29_v2 = vld [vmem:[%s2244_s0] sm:$0xff]  ;;  %v1967_v7 = vld [vmem:[#allocation2 + $0x288] ss:$20 sps:$4 sm:$0xff]   ;;  %v1979_v15 = vld [vmem:[#allocation2 + $0x2d8] ss:$20 sps:$4 sm:$0xff]   ;;  %vm2149_vm1 = vmmov 0  }
  0x29   :  { %1234 = vmatprep.subr.bf16.mxu0 %v1904_v24  ;;  %1357 = vmatprep.subr.bf16.mxu1 %v1906_v25  ;;  %v1966_v3 = vld [vmem:[#allocation2 + $0x284] ss:$20 sps:$4 sm:$0xff]   ;;  %v1969_v4 = vld [vmem:[#allocation2 + $0x28c] ss:$20 sps:$4 sm:$0xff]   ;;  %v2192_v5 = vpack.c.bf16 %v29_v2, %v29_v2  ;;  %v1975_v9 = vld [vmem:[#allocation2 + $0x2b4] ss:$20 sps:$4 sm:$0xff]  }
  0x2a   :  { %v1964_v6 = vld [vmem:[#allocation2 + $0x280] ss:$20 sps:$4 sm:$0xff]   ;;  %v1970_v10 = vld [vmem:[#allocation2 + $0x2a8] ss:$20 sps:$4 sm:$0xff]   ;;  %v1973_v11 = vld [vmem:[#allocation2 + $0x2b0] ss:$20 sps:$4 sm:$0xff]  }
  0x2b   :  { %v1972_v8 = vld [vmem:[#allocation2 + $0x2ac] ss:$20 sps:$4 sm:$0xff]   ;;  %v1978_v12 = vld [vmem:[#allocation2 + $0x2d4] ss:$20 sps:$4 sm:$0xff]   ;;  %v1981_v13 = vld [vmem:[#allocation2 + $0x2dc] ss:$20 sps:$4 sm:$0xff]  }
  0x2c   :  { %1235 = vmatpush1.bf16.msra.mxu0 %v1908_v26  ;;  %1358 = vmatpush1.bf16.msra.mxu1 %v1909_v27  ;;  %v1976_v14 = vld [vmem:[#allocation2 + $0x2d0] ss:$20 sps:$4 sm:$0xff]   ;;  %v1982_v18 = vld [vmem:[#allocation2 + $0x2f8] ss:$20 sps:$4 sm:$0xff]   ;;  %v1985_v19 = vld [vmem:[#allocation2 + $0x300] ss:$20 sps:$4 sm:$0xff]  }
  0x2d   :  { %1236 = vmatprep.subr.bf16.mxu0 %v1910_v28  ;;  %1359 = vmatprep.subr.bf16.mxu1 %v1912_v29  ;;  %v1984_v16 = vld [vmem:[#allocation2 + $0x2fc] ss:$20 sps:$4 sm:$0xff]   ;;  %v1987_v17 = vld [vmem:[#allocation2 + $0x304] ss:$20 sps:$4 sm:$0xff]   ;;  %v1993_v21 = vld [vmem:[#allocation2 + $0x32c] ss:$20 sps:$4 sm:$0xff]  }
  0x2e   :  { %v1990_v20 = vld [vmem:[#allocation2 + $0x324] ss:$20 sps:$4 sm:$0xff]   ;;  %v1988_v22 = vld [vmem:[#allocation2 + $0x320] ss:$20 sps:$4 sm:$0xff]   ;;  %v1991_v23 = vld [vmem:[#allocation2 + $0x328] ss:$20 sps:$4 sm:$0xff]  }
  0x2f   :  { %v1996_v24 = vld [vmem:[#allocation2 + $0x34c] ss:$20 sps:$4 sm:$0xff]   ;;  %v1999_v25 = vld [vmem:[#allocation2 + $0x354] ss:$20 sps:$4 sm:$0xff]   ;;  %v1997_v27 = vld [vmem:[#allocation2 + $0x350] ss:$20 sps:$4 sm:$0xff]  }
  0x30   :  { %1237 = vmatpush1.bf16.msra.mxu0 %v1914_v30  ;;  %1360 = vmatpush1.bf16.msra.mxu1 %v1915_v31  ;;  %v1994_v26 = vld [vmem:[#allocation2 + $0x348] ss:$20 sps:$4 sm:$0xff]   ;;  %v2000_v31 = vld [vmem:[#allocation2 + $0x370] ss:$20 sps:$4 sm:$0xff]   ;;  %v2051_v2 = vld [vmem:[#allocation2 + $0x4b8] ss:$20 sps:$4 sm:$0xff]  }
  0x31   :  { %1238 = vmatprep.subr.bf16.mxu0 %v1916_v32  ;;  %1361 = vmatprep.subr.bf16.mxu1 %v1918_v33  ;;  %v2002_v28 = vld [vmem:[#allocation2 + $0x374] ss:$20 sps:$4 sm:$0xff]   ;;  %v2005_v29 = vld [vmem:[#allocation2 + $0x37c] ss:$20 sps:$4 sm:$0xff]   ;;  %v2003_v33 = vld [vmem:[#allocation2 + $0x378] ss:$20 sps:$4 sm:$0xff]  }
  0x32   :  { %v32_v30 = vld [vmem:[%s2244_s0 + $0x18] sm:$0xff]  ;;  %v2026_v46 = vld [vmem:[#allocation2 + $0x414] ss:$20 sps:$4 sm:$0xff]  }
  0x33   :  { %v2199_v32 = vpack.c.bf16 %v32_v30, %v32_v30 }
  0x34   :  { %1239 = vmatpush1.bf16.msra.mxu0 %v1920_v34  ;;  %1362 = vmatpush1.bf16.msra.mxu1 %v1921_v35  ;;  %v2008_v34 = vld [vmem:[#allocation2 + $0x39c] ss:$20 sps:$4 sm:$0xff]   ;;  %v2011_v35 = vld [vmem:[#allocation2 + $0x3a4] ss:$20 sps:$4 sm:$0xff]  }
  0x35   :  { %1240 = vmatprep.subr.bf16.mxu0 %v1922_v36  ;;  %1363 = vmatprep.subr.bf16.mxu1 %v1924_v37  ;;  %v2006_v36 = vld [vmem:[#allocation2 + $0x398] ss:$20 sps:$4 sm:$0xff]   ;;  %v2009_v37 = vld [vmem:[#allocation2 + $0x3a0] ss:$20 sps:$4 sm:$0xff]  }
  0x38   :  { %1241 = vmatpush1.bf16.msra.mxu0 %v1926_v38  ;;  %1364 = vmatpush1.bf16.msra.mxu1 %v1927_v39  ;;  %v2014_v38 = vld [vmem:[#allocation2 + $0x3c4] ss:$20 sps:$4 sm:$0xff]   ;;  %v2017_v39 = vld [vmem:[#allocation2 + $0x3cc] ss:$20 sps:$4 sm:$0xff]  }
  0x39   :  { %1242 = vmatprep.subr.bf16.mxu0 %v1928_v40  ;;  %1365 = vmatprep.subr.bf16.mxu1 %v1930_v41  ;;  %v2012_v40 = vld [vmem:[#allocation2 + $0x3c0] ss:$20 sps:$4 sm:$0xff]   ;;  %v2015_v41 = vld [vmem:[#allocation2 + $0x3c8] ss:$20 sps:$4 sm:$0xff]  }
  0x3c   :  { %1243 = vmatpush1.bf16.msra.mxu0 %v1932_v42  ;;  %1366 = vmatpush1.bf16.msra.mxu1 %v1933_v43  ;;  %v2020_v42 = vld [vmem:[#allocation2 + $0x3ec] ss:$20 sps:$4 sm:$0xff]   ;;  %v2023_v43 = vld [vmem:[#allocation2 + $0x3f4] ss:$20 sps:$4 sm:$0xff]  }
  0x3d   :  { %1244 = vmatprep.subr.bf16.mxu0 %v1934_v44  ;;  %1367 = vmatprep.subr.bf16.mxu1 %v1936_v45  ;;  %v2018_v44 = vld [vmem:[#allocation2 + $0x3e8] ss:$20 sps:$4 sm:$0xff]   ;;  %v2021_v45 = vld [vmem:[#allocation2 + $0x3f0] ss:$20 sps:$4 sm:$0xff]  }
  0x40   :  { %1245 = vmatpush1.bf16.msra.mxu0 %v1938_v47  ;;  %1368 = vmatpush1.bf16.msra.mxu1 %v1939_v49  ;;  %v2029_v47 = vld [vmem:[#allocation2 + $0x41c] ss:$20 sps:$4 sm:$0xff]  }
  0x41   :  { %1246 = vmatprep.subr.bf16.mxu0 %v1940_v50  ;;  %1369 = vmatprep.subr.bf16.mxu1 %v1942_v51  ;;  %v2024_v49 = vld [vmem:[#allocation2 + $0x410] ss:$20 sps:$4 sm:$0xff]   ;;  %v2027_v50 = vld [vmem:[#allocation2 + $0x418] ss:$20 sps:$4 sm:$0xff]  }
  0x42   :  { %v2032_v51 = vld [vmem:[#allocation2 + $0x43c] ss:$20 sps:$4 sm:$0xff]  }
  0x44   :  { %1247 = vmatpush1.bf16.msra.mxu0 %v1944_v52  ;;  %1370 = vmatpush1.bf16.msra.mxu1 %v1945_v53  ;;  %v2035_v52 = vld [vmem:[#allocation2 + $0x444] ss:$20 sps:$4 sm:$0xff]  }
  0x45   :  { %1248 = vmatprep.subr.bf16.mxu0 %v1946_v54  ;;  %1371 = vmatprep.subr.bf16.mxu1 %v1948_v55  ;;  %v2030_v53 = vld [vmem:[#allocation2 + $0x438] ss:$20 sps:$4 sm:$0xff]   ;;  %v2033_v54 = vld [vmem:[#allocation2 + $0x440] ss:$20 sps:$4 sm:$0xff]  }
  0x46   :  { %v2038_v55 = vld [vmem:[#allocation2 + $0x464] ss:$20 sps:$4 sm:$0xff]  }
  0x48   :  { %1249 = vmatpush1.bf16.msra.mxu0 %v1950_v56  ;;  %1372 = vmatpush1.bf16.msra.mxu1 %v1951_v57  ;;  %v2041_v56 = vld [vmem:[#allocation2 + $0x46c] ss:$20 sps:$4 sm:$0xff]  }
  0x49   :  { %1250 = vmatprep.subr.bf16.mxu0 %v1952_v58  ;;  %1373 = vmatprep.subr.bf16.mxu1 %v1954_v59  ;;  %v2036_v57 = vld [vmem:[#allocation2 + $0x460] ss:$20 sps:$4 sm:$0xff]   ;;  %v2039_v58 = vld [vmem:[#allocation2 + $0x468] ss:$20 sps:$4 sm:$0xff]  }
  0x4a   :  { %v2044_v59 = vld [vmem:[#allocation2 + $0x48c] ss:$20 sps:$4 sm:$0xff]  }
  0x4c   :  { %1251 = vmatpush1.bf16.msra.mxu0 %v1956_v60  ;;  %1374 = vmatpush1.bf16.msra.mxu1 %v1957_v61  ;;  %v2047_v60 = vld [vmem:[#allocation2 + $0x494] ss:$20 sps:$4 sm:$0xff]  }
  0x4d   :  { %1252 = vmatprep.subr.bf16.mxu0 %v1958_v62  ;;  %1375 = vmatprep.subr.bf16.mxu1 %v1960_v63  ;;  %v2042_v61 = vld [vmem:[#allocation2 + $0x488] ss:$20 sps:$4 sm:$0xff]   ;;  %v2045_v62 = vld [vmem:[#allocation2 + $0x490] ss:$20 sps:$4 sm:$0xff]  }
  0x4e   :  { %v2050_v63 = vld [vmem:[#allocation2 + $0x4b4] ss:$20 sps:$4 sm:$0xff]  }
  0x50   :  { %1253 = vmatpush1.bf16.msra.mxu0 %v1962_v0  ;;  %1376 = vmatpush1.bf16.msra.mxu1 %v1963_v1  ;;  %v2053_v0 = vld [vmem:[#allocation2 + $0x4bc] ss:$20 sps:$4 sm:$0xff]  }
  0x51   :  { %1263 = vmatprep.subr.bf16.mxu0 %v1966_v3  ;;  %1386 = vmatprep.subr.bf16.mxu1 %v1969_v4  ;;  %v2048_v1 = vld [vmem:[#allocation2 + $0x4b0] ss:$20 sps:$4 sm:$0xff]  }
  0x52   :  { %v2056_v3 = vld [vmem:[#allocation2 + $0x4dc] ss:$20 sps:$4 sm:$0xff]   ;;  %v2059_v4 = vld [vmem:[#allocation2 + $0x4e4] ss:$20 sps:$4 sm:$0xff]  }
  0x53   :  { %1255 = vmatmul.mubr.bf16.vlgmr.msra.gmra.mrb[0].mxu0 %v2192_v5  ;;  %1378 = vmatmul.mubr.bf16.vlgmr.msra.gmra.mrb[0].mxu1 %v2192_v5 }
  0x54   :  { %1264 = vmatpush1.bf16.msra.mxu0 %v1964_v6  ;;  %1387 = vmatpush1.bf16.msra.mxu1 %v1967_v7  ;;  %v2054_v6 = vld [vmem:[#allocation2 + $0x4d8] ss:$20 sps:$4 sm:$0xff]   ;;  %v2057_v7 = vld [vmem:[#allocation2 + $0x4e0] ss:$20 sps:$4 sm:$0xff]  }
  0x55   :  { %1265 = vmatprep.subr.bf16.mxu0 %v1972_v8  ;;  %1388 = vmatprep.subr.bf16.mxu1 %v1975_v9  ;;  %v2062_v8 = vld [vmem:[#allocation2 + $0x504] ss:$20 sps:$4 sm:$0xff]   ;;  %v31_v9 = vld [vmem:[%s2244_s0 + $0x10] sm:$0xff] }
  0x56   :  { %1295 = vmatprep.mubr.bf16.mxu0 %v2199_v32  ;;  %1418 = vmatprep.mubr.bf16.mxu1 %v2199_v32 }
  0x58   :  { %1266 = vmatpush1.bf16.msra.mxu0 %v1970_v10  ;;  %1389 = vmatpush1.bf16.msra.mxu1 %v1973_v11  ;;  %v2065_v10 = vld [vmem:[#allocation2 + $0x50c] ss:$20 sps:$4 sm:$0xff]  }
  0x59   :  { %1267 = vmatprep.subr.bf16.mxu0 %v1978_v12  ;;  %1390 = vmatprep.subr.bf16.mxu1 %v1981_v13  ;;  %v2060_v11 = vld [vmem:[#allocation2 + $0x500] ss:$20 sps:$4 sm:$0xff]   ;;  %v2063_v12 = vld [vmem:[#allocation2 + $0x508] ss:$20 sps:$4 sm:$0xff]   ;;  %v2206_v13 = vpack.c.bf16 %v31_v9, %v31_v9 }
  0x5c   :  { %1268 = vmatpush1.bf16.msra.mxu0 %v1976_v14  ;;  %1391 = vmatpush1.bf16.msra.mxu1 %v1979_v15  ;;  %v2068_v14 = vld [vmem:[#allocation2 + $0x52c] ss:$20 sps:$4 sm:$0xff]   ;;  %v2071_v15 = vld [vmem:[#allocation2 + $0x534] ss:$20 sps:$4 sm:$0xff]  }
  0x5d   :  { %1269 = vmatprep.subr.bf16.mxu0 %v1984_v16  ;;  %1392 = vmatprep.subr.bf16.mxu1 %v1987_v17  ;;  %v2066_v16 = vld [vmem:[#allocation2 + $0x528] ss:$20 sps:$4 sm:$0xff]   ;;  %v2069_v17 = vld [vmem:[#allocation2 + $0x530] ss:$20 sps:$4 sm:$0xff]  }
  0x60   :  { %1270 = vmatpush1.bf16.msra.mxu0 %v1982_v18  ;;  %1393 = vmatpush1.bf16.msra.mxu1 %v1985_v19  ;;  %v2074_v18 = vld [vmem:[#allocation2 + $0x554] ss:$20 sps:$4 sm:$0xff]   ;;  %v2077_v19 = vld [vmem:[#allocation2 + $0x55c] ss:$20 sps:$4 sm:$0xff]  }
  0x61   :  { %1271 = vmatprep.subr.bf16.mxu0 %v1990_v20  ;;  %1394 = vmatprep.subr.bf16.mxu1 %v1993_v21  ;;  %v2147_v20 = vmov 0   ;;  %v2072_v21 = vld [vmem:[#allocation2 + $0x550] ss:$20 sps:$4 sm:$0xff]  }
  0x64   :  { %1272 = vmatpush1.bf16.msra.mxu0 %v1988_v22  ;;  %1395 = vmatpush1.bf16.msra.mxu1 %v1991_v23  ;;  %v2075_v22 = vld [vmem:[#allocation2 + $0x558] ss:$20 sps:$4 sm:$0xff]   ;;  %v2080_v23 = vld [vmem:[#allocation2 + $0x57c] ss:$20 sps:$4 sm:$0xff]  }
  0x65   :  { %1273 = vmatprep.subr.bf16.mxu0 %v1996_v24  ;;  %1396 = vmatprep.subr.bf16.mxu1 %v1999_v25  ;;  %v2083_v24 = vld [vmem:[#allocation2 + $0x584] ss:$20 sps:$4 sm:$0xff]  }
  0x66   :  { %v2078_v25 = vld [vmem:[#allocation2 + $0x578] ss:$20 sps:$4 sm:$0xff]  }
  0x68   :  { %1274 = vmatpush1.bf16.msra.mxu0 %v1994_v26  ;;  %1397 = vmatpush1.bf16.msra.mxu1 %v1997_v27  ;;  %v2081_v26 = vld [vmem:[#allocation2 + $0x580] ss:$20 sps:$4 sm:$0xff]  }
  0x69   :  { %1275 = vmatprep.subr.bf16.mxu0 %v2002_v28  ;;  %1398 = vmatprep.subr.bf16.mxu1 %v2005_v29  ;;  %v33_v27 = vld [vmem:[%s2244_s0 + $0x20] sm:$0xff] }
  0x6a   :  { %v2084_v28 = vld [vmem:[#allocation2 + $0x150] ss:$20 sps:$4 sm:$0xff]   ;;  %v2213_v30 = vpack.c.bf16 %v33_v27, %v33_v27 }
  0x6b   :  { %v2086_v29 = vld [vmem:[#allocation2 + $0x3d0] ss:$20 sps:$4 sm:$0xff]  }
  0x6c   :  { %1276 = vmatpush1.bf16.msra.mxu0 %v2000_v31  ;;  %1399 = vmatpush1.bf16.msra.mxu1 %v2003_v33  ;;  %v2085_v31 = vld [vmem:[#allocation2 + $0x10] ss:$20 sps:$4 sm:$0xff]  }
  0x6d   :  { %1277 = vmatprep.subr.bf16.mxu0 %v2008_v34  ;;  %1400 = vmatprep.subr.bf16.mxu1 %v2011_v35  ;;  %v2087_v33 = vld [vmem:[#allocation2 + $0x290] ss:$20 sps:$4 sm:$0xff]   ;;  %v2088_v34 = vld [vmem:[#allocation2 + $0x178] ss:$20 sps:$4 sm:$0xff]  }
  0x6e   :  { %v2090_v35 = vld [vmem:[#allocation2 + $0x3f8] ss:$20 sps:$4 sm:$0xff]  }
  0x70   :  { %1278 = vmatpush1.bf16.msra.mxu0 %v2006_v36  ;;  %1401 = vmatpush1.bf16.msra.mxu1 %v2009_v37  ;;  %v2089_v36 = vld [vmem:[#allocation2 + $0x38] ss:$20 sps:$4 sm:$0xff]  }
  0x71   :  { %1279 = vmatprep.subr.bf16.mxu0 %v2014_v38  ;;  %1402 = vmatprep.subr.bf16.mxu1 %v2017_v39  ;;  %v2091_v37 = vld [vmem:[#allocation2 + $0x2b8] ss:$20 sps:$4 sm:$0xff]   ;;  %v2092_v38 = vld [vmem:[#allocation2 + $0x1a0] ss:$20 sps:$4 sm:$0xff]  }
  0x72   :  { %v2094_v39 = vld [vmem:[#allocation2 + $0x420] ss:$20 sps:$4 sm:$0xff]  }
  0x74   :  { %1280 = vmatpush1.bf16.msra.mxu0 %v2012_v40  ;;  %1403 = vmatpush1.bf16.msra.mxu1 %v2015_v41  ;;  %v2093_v40 = vld [vmem:[#allocation2 + $0x60] ss:$20 sps:$4 sm:$0xff]  }
  0x75   :  { %1281 = vmatprep.subr.bf16.mxu0 %v2020_v42  ;;  %1404 = vmatprep.subr.bf16.mxu1 %v2023_v43  ;;  %v2095_v41 = vld [vmem:[#allocation2 + $0x2e0] ss:$20 sps:$4 sm:$0xff]   ;;  %v2096_v42 = vld [vmem:[#allocation2 + $0x1c8] ss:$20 sps:$4 sm:$0xff]  }
  0x76   :  { %v2098_v43 = vld [vmem:[#allocation2 + $0x448] ss:$20 sps:$4 sm:$0xff]  }
  0x78   :  { %1282 = vmatpush1.bf16.msra.mxu0 %v2018_v44  ;;  %1405 = vmatpush1.bf16.msra.mxu1 %v2021_v45  ;;  %v2097_v44 = vld [vmem:[#allocation2 + $0x88] ss:$20 sps:$4 sm:$0xff]  }
  0x79   :  { %1283 = vmatprep.subr.bf16.mxu0 %v2026_v46  ;;  %1406 = vmatprep.subr.bf16.mxu1 %v2029_v47  ;;  %v2099_v45 = vld [vmem:[#allocation2 + $0x308] ss:$20 sps:$4 sm:$0xff]   ;;  %v2100_v46 = vld [vmem:[#allocation2 + $0x1f0] ss:$20 sps:$4 sm:$0xff]  }
  0x7a   :  { %v2102_v47 = vld [vmem:[#allocation2 + $0x470] ss:$20 sps:$4 sm:$0xff]  }
  0x7c   :  { %1284 = vmatpush1.bf16.msra.mxu0 %v2024_v49  ;;  %1407 = vmatpush1.bf16.msra.mxu1 %v2027_v50  ;;  %v2104_v49 = vld [vmem:[#allocation2 + $0x218] ss:$20 sps:$4 sm:$0xff]  }
  0x7d   :  { %1285 = vmatprep.subr.bf16.mxu0 %v2032_v51  ;;  %1408 = vmatprep.subr.bf16.mxu1 %v2035_v52  ;;  %v2106_v50 = vld [vmem:[#allocation2 + $0x498] ss:$20 sps:$4 sm:$0xff]  }
  0x7e   :  { %v2105_v51 = vld [vmem:[#allocation2 + $0xd8] ss:$20 sps:$4 sm:$0xff]  }
  0x7f   :  { %v2107_v52 = vld [vmem:[#allocation2 + $0x358] ss:$20 sps:$4 sm:$0xff]  }
  0x80   :  { %1286 = vmatpush1.bf16.msra.mxu0 %v2030_v53  ;;  %1409 = vmatpush1.bf16.msra.mxu1 %v2033_v54  ;;  %v2108_v53 = vld [vmem:[#allocation2 + $0x240] ss:$20 sps:$4 sm:$0xff]  }
  0x81   :  { %1287 = vmatprep.subr.bf16.mxu0 %v2038_v55  ;;  %1410 = vmatprep.subr.bf16.mxu1 %v2041_v56  ;;  %v2110_v54 = vld [vmem:[#allocation2 + $0x4c0] ss:$20 sps:$4 sm:$0xff]  }
  0x82   :  { %v2109_v55 = vld [vmem:[#allocation2 + $0x100] ss:$20 sps:$4 sm:$0xff]  }
  0x83   :  { %v2111_v56 = vld [vmem:[#allocation2 + $0x380] ss:$20 sps:$4 sm:$0xff]  }
  0x84   :  { %1288 = vmatpush1.bf16.msra.mxu0 %v2036_v57  ;;  %1411 = vmatpush1.bf16.msra.mxu1 %v2039_v58  ;;  %v2112_v57 = vld [vmem:[#allocation2 + $0x268] ss:$20 sps:$4 sm:$0xff]  }
  0x85   :  { %1289 = vmatprep.subr.bf16.mxu0 %v2044_v59  ;;  %1412 = vmatprep.subr.bf16.mxu1 %v2047_v60  ;;  %v2114_v58 = vld [vmem:[#allocation2 + $0x4e8] ss:$20 sps:$4 sm:$0xff]  }
  0x86   :  { %v2113_v59 = vld [vmem:[#allocation2 + $0x128] ss:$20 sps:$4 sm:$0xff]  }
  0x87   :  { %v2115_v60 = vld [vmem:[#allocation2 + $0x3a8] ss:$20 sps:$4 sm:$0xff]  }
  0x88   :  { %1290 = vmatpush1.bf16.msra.mxu0 %v2042_v61  ;;  %1413 = vmatpush1.bf16.msra.mxu1 %v2045_v62  ;;  %v2116_v61 = vld [vmem:[#allocation2 + $0x510] ss:$20 sps:$4 sm:$0xff]   ;;  %v2148_v62 = vmov 0.0  }
  0x89   :  { %1291 = vmatprep.subr.bf16.mxu0 %v2050_v63  ;;  %1414 = vmatprep.subr.bf16.mxu1 %v2053_v0  ;;  %v2117_v63 = vld [vmem:[#allocation2 + $0x538] ss:$20 sps:$4 sm:$0xff]   ;;  %v2118_v0 = vld [vmem:[#allocation2 + $0x560] ss:$20 sps:$4 sm:$0xff]  }
  0x8c   :  { %1292 = vmatpush1.bf16.msra.mxu0 %v2048_v1  ;;  %1415 = vmatpush1.bf16.msra.mxu1 %v2051_v2  ;;  %v2119_v1 = vld [vmem:[#allocation2 + $0x588] ss:$20 sps:$4 sm:$0xff]   ;;  %v257_v2 = vlaneseq }
  0x8d   :  { %1293 = vmatprep.subr.bf16.mxu0 %v2056_v3  ;;  %1416 = vmatprep.subr.bf16.mxu1 %v2059_v4 }
  0x8e   :  { %v258_v3 = vshrl.u32 %v257_v2, 7 }
  0x90   :  { %1294 = vmatpush1.bf16.msra.mxu0 %v2054_v6  ;;  %1417 = vmatpush1.bf16.msra.mxu1 %v2057_v7  ;;  %v267_v4 = vsub.s32 2, %v258_v3  ;;  %v255_v6 = vld [vmem:[%s2246_s2] sm:$0x1f]  ;;  %v263_v7 = vsub.s32 1, %v258_v3 }
  0x91   :  { %1304 = vmatprep.subr.bf16.mxu0 %v2062_v8  ;;  %1427 = vmatprep.subr.bf16.mxu1 %v2065_v10  ;;  %v271_v8 = vsub.s32 3, %v258_v3 }
  0x92   :  { %v268_v10 = vrot.slane %v255_v6, %v267_v4 }
  0x93   :  { %1296 = vmatmul.mubr.bf16.vlgmr.msra.gmra.mrb[0].mxu0 %v2206_v13  ;;  %1419 = vmatmul.mubr.bf16.vlgmr.msra.gmra.mrb[0].mxu1 %v2206_v13 }
  0x94   :  { %1305 = vmatpush1.bf16.msra.mxu0 %v2060_v11  ;;  %1428 = vmatpush1.bf16.msra.mxu1 %v2063_v12  ;;  %v264_v11 = vrot.slane %v255_v6, %v263_v7  ;;  %v272_v12 = vrot.slane %v255_v6, %v271_v8 }
  0x95   :  { %1306 = vmatprep.subr.bf16.mxu0 %v2068_v14  ;;  %1429 = vmatprep.subr.bf16.mxu1 %v2071_v15 }
  0x96   :  { %1336 = vmatprep.mubr.bf16.mxu0 %v2147_v20  ;;  %1459 = vmatprep.mubr.bf16.mxu1 %v2147_v20 }
  0x98   :  { %1307 = vmatpush1.bf16.msra.mxu0 %v2066_v16  ;;  %1430 = vmatpush1.bf16.msra.mxu1 %v2069_v17 }
  0x99   :  { %1308 = vmatprep.subr.bf16.mxu0 %v2074_v18  ;;  %1431 = vmatprep.subr.bf16.mxu1 %v2077_v19 }
  0x9c   :  { %1309 = vmatpush1.bf16.msra.mxu0 %v2072_v21  ;;  %1432 = vmatpush1.bf16.msra.mxu1 %v2075_v22 }
  0x9d   :  { %1310 = vmatprep.subr.bf16.mxu0 %v2080_v23  ;;  %1433 = vmatprep.subr.bf16.mxu1 %v2083_v24 }
  0xa0   :  { %1311 = vmatpush1.bf16.msra.mxu0 %v2078_v25  ;;  %1434 = vmatpush1.bf16.msra.mxu1 %v2081_v26  ;;  %v275_v25 = vsub.s32 4, %v258_v3 }
  0xa1   :  { %1781 = vmatprep.subr.bf16.mxu0 %v2084_v28  ;;  %1803 = vmatprep.subr.bf16.mxu1 %v2086_v29 }
  0xa2   :  { %v276_v27 = vrot.slane %v255_v6, %v275_v25 }
  0xa3   :  { %1778 = vmatmul.mubr.msk.bf16.vlgmr.msra.gmra.mrb[0].mxu0 %vm1218_vm0, %v2213_v30  ;;  %1779 = vmatmul.mubr.msk.bf16.vlgmr.msra.gmra.mrb[0].mxu1 %vm1218_vm0, %v2213_v30 }
  0xa4   :  { %1782 = vmatpush3.bf16.msra.mxu0 %v2085_v31  ;;  %1804 = vmatpush3.bf16.msra.mxu1 %v2087_v33 }
  0xa5   :  { %1783 = vmatprep.subr.bf16.mxu0 %v2088_v34  ;;  %1805 = vmatprep.subr.bf16.mxu1 %v2090_v35 }
  0xa6   :  { %1500 = vmatprep.mubr.bf16.mxu0 %v2185_v48  ;;  %1540 = vmatprep.mubr.bf16.mxu1 %v2199_v32  ;;  %v2101_v48 = vld [vmem:[#allocation2 + $0xb0] ss:$20 sps:$4 sm:$0xff]  }
  0xa7   :  { %v2103_v32 = vld [vmem:[#allocation2 + $0x330] ss:$20 sps:$4 sm:$0xff]  }
  0xa8   :  { %1784 = vmatpush3.bf16.msra.mxu0 %v2089_v36  ;;  %1806 = vmatpush3.bf16.msra.mxu1 %v2091_v37 }
  0xa9   :  { %1785 = vmatprep.subr.bf16.mxu0 %v2092_v38  ;;  %1807 = vmatprep.subr.bf16.mxu1 %v2094_v39 }
  0xac   :  { %1786 = vmatpush3.bf16.msra.mxu0 %v2093_v40  ;;  %1808 = vmatpush3.bf16.msra.mxu1 %v2095_v41 }
  0xad   :  { %1787 = vmatprep.subr.bf16.mxu0 %v2096_v42  ;;  %1809 = vmatprep.subr.bf16.mxu1 %v2098_v43 }
  0xb0   :  { %1788 = vmatpush3.bf16.msra.mxu0 %v2097_v44  ;;  %1810 = vmatpush3.bf16.msra.mxu1 %v2099_v45 }
  0xb1   :  { %1789 = vmatprep.subr.bf16.mxu0 %v2100_v46  ;;  %1811 = vmatprep.subr.bf16.mxu1 %v2102_v47 }
  0xb4   :  { %1790 = vmatpush3.bf16.msra.mxu0 %v2101_v48  ;;  %1812 = vmatpush3.bf16.msra.mxu1 %v2103_v32 }
  0xb5   :  { %1791 = vmatprep.subr.bf16.mxu0 %v2104_v49  ;;  %1813 = vmatprep.subr.bf16.mxu1 %v2106_v50 }
  0xb8   :  { %1792 = vmatpush3.bf16.msra.mxu0 %v2105_v51  ;;  %1814 = vmatpush3.bf16.msra.mxu1 %v2107_v52 }
  0xb9   :  { %1793 = vmatprep.subr.bf16.mxu0 %v2108_v53  ;;  %1815 = vmatprep.subr.bf16.mxu1 %v2110_v54 }
  0xbc   :  { %1794 = vmatpush3.bf16.msra.mxu0 %v2109_v55  ;;  %1816 = vmatpush3.bf16.msra.mxu1 %v2111_v56 }
  0xbd   :  { %1795 = vmatprep.subr.bf16.mxu0 %v2112_v57  ;;  %1817 = vmatprep.subr.bf16.mxu1 %v2114_v58 }
  0xc0   :  { %1796 = vmatpush3.bf16.msra.mxu0 %v2113_v59  ;;  %1818 = vmatpush3.bf16.msra.mxu1 %v2115_v60 }
  0xc1   :  { %1830 = vmatprep.subr.bf16.mxu0 %v2148_v62 }
  0xc3   :  { %1501 = vmatmul.mubr.bf16.vlgmr.msra.gmra.mrb[4].mxu0 %v2192_v5  ;;  %1541 = vmatmul.mubr.bf16.vlgmr.msra.gmra.mrb[4].mxu1 %v2206_v13  ;;  %v259_v5 = vsub.s32 0, %v258_v3 }
  0xc4   :  { %1831 = vmatpush3.bf16.msra.mxu0 %v2116_v61  ;;  %1838 = vmatprep.mubr.msk.bf16.mxu0 %vm2149_vm1, %v2148_v62 }
  0xc5   :  { %1832 = vmatprep.subr.bf16.mxu0 %v2148_v62  ;;  %v260_v9 = vrot.slane %v255_v6, %v259_v5 }
  0xc8   :  { %1833 = vmatpush3.bf16.msra.mxu0 %v2117_v63 }
  0xc9   :  { %1834 = vmatprep.subr.bf16.mxu0 %v2148_v62 }
  0xcc   :  { %1835 = vmatpush3.bf16.msra.mxu0 %v2118_v0 }
  0xcd   :  { %1836 = vmatprep.subr.bf16.mxu0 %v2148_v62 }
  0xd0   :  { %1837 = vmatpush3.bf16.msra.mxu0 %v2119_v1 }
  0xd3   :  { %1839 = vmatmul.mubr.msk.bf16.vlgmr.msra.gmra.mrb[8].mxu0 %vm1218_vm0, %v2213_v30 }
 0x176   :  { %v1338_v13 = vpop.f32.mrb[0].mxu0  ;;  %v1461_v14 = vpop.f32.mrb[0].mxu1 }
 0x177   :  { %v1842_v15 = vadd.f32 %v1338_v13, %v260_v9  ;;  %v1844_v16 = vadd.f32 %v1461_v14, %v268_v10  ;;  %v1340_v17 = vpop.f32.mrb[1].mxu0  ;;  %v1463_v18 = vpop.f32.mrb[1].mxu1 }
 0x178   :  { %v1843_v19 = vadd.f32 %v1340_v17, %v264_v11  ;;  %v1845_v20 = vadd.f32 %v1463_v18, %v272_v12  ;;  %v1342_v21 = vpop.f32.mrb[2].mxu0  ;;  %v1465_v22 = vpop.f32.mrb[2].mxu1 }
 0x179   :  { %1588 = vst [vmem:[%s2247_s3] sm:$0xff] %v1842_v15  ;;  %1590 = vst [vmem:[%s2247_s3 + $0x10] sm:$0xff] %v1844_v16  ;;  %v1343_v23 = vpop.f32.mrb[3].mxu0  ;;  %v1466_v24 = vpop.f32.mrb[3].mxu1 }
 0x17a   :  { %1589 = vst [vmem:[%s2247_s3 + $0x8] sm:$0xff] %v1843_v19  ;;  %1591 = vst [vmem:[%s2247_s3 + $0x18] sm:$0xff] %v1845_v20 }
 0x196   :  { %v1797_v26 = vpop.f32.mrb[4].mxu0  ;;  %v1819_v28 = vpop.f32.mrb[4].mxu1 }
 0x197   :  { %v1798_v29 = vpop.f32.mrb[5].mxu0  ;;  %v1820_v30 = vpop.f32.mrb[5].mxu1 }
 0x198   :  { %v1799_v31 = vadd.f32 %v1798_v29, %v1797_v26  ;;  %v1800_v33 = vpop.f32.mrb[6].mxu0  ;;  %v1821_v34 = vadd.f32 %v1820_v30, %v1819_v28  ;;  %v1822_v35 = vpop.f32.mrb[6].mxu1 }
 0x199   :  { %v1801_v36 = vpop.f32.mrb[7].mxu0  ;;  %v1823_v37 = vpop.f32.mrb[7].mxu1 }
 0x19a   :  { %v1503_v38 = vadd.f32 %v1799_v31, %v276_v27 }
 0x19c   :  { %v1543_v39 = vadd.f32 %v1821_v34, %v1503_v38 }
 0x1a6   :  { %v1582_v40 = vpop.f32.mrb[8].mxu0 }
 0x1a7   :  { %v1583_v41 = vadd.f32 %v1582_v40, %v1543_v39  ;;  %v1840_v42 = vpop.f32.mrb[9].mxu0 }
 0x1a8   :  { %v1585_v43 = vpop.f32.mrb[10].mxu0 }
 0x1a9   :  { %1592 = vst.msk [vmem:[%s2247_s3 + $0x20] sm:$0xff] %vm1218_vm0, %v1583_v41  ;;  %v1841_v44 = vpop.f32.mrb[11].mxu0 }
 0x1aa   :  { %1597 = vsyncpa [#allocation3], 1 }

</bundles_post_ra>
